<compile_context>
chip_gen: v5e
topology: v5e:2x2
jax: 0.10.0
libtpu: 0.0.40
codegen_flags: <defaults>
</compile_context>

<pallas_src>
import jax
import jax.numpy as jnp
from jax import lax
from jax.experimental import pallas as pl
from jax.experimental.pallas import tpu as pltpu


def mlp_kernel(x_ref, w1_ref, b1_ref, w2_ref, b2_ref, w3_ref, b3_ref, o_ref):
    def sigmoid(z):
        # Single EUP op (tanh); exact identity sigmoid(z) = 0.5*(1 + tanh(z/2)).
        return 0.5 * jnp.tanh(0.5 * z) + 0.5

    # In-kernel bf16 cast; batch stays on the lane axis for hidden layers by
    # contracting x's feature axis (no explicit transpose materialized in HBM).
    xb = x_ref[...].astype(jnp.bfloat16)                         # [tb, n_in]
    h = lax.dot_general(w1_ref[...], xb, (((1,), (1,)), ((), ())),
                        preferred_element_type=jnp.float32)      # [n_hid, tb]
    h = sigmoid(h + b1_ref[...])                                 # f32, lane-dense
    h = jnp.dot(w2_ref[...], h.astype(w2_ref.dtype),
                preferred_element_type=jnp.float32)              # [n_hid, tb]
    h = sigmoid(h + b2_ref[...])
    # Final layer directly in natural [tb, n_out] layout (masked vst on the
    # 8-wide lane axis is trivial; it saves a whole wrapper transpose op).
    y = lax.dot_general(h.astype(w3_ref.dtype), w3_ref[...],
                        (((0,), (1,)), ((), ())),
                        preferred_element_type=jnp.float32)      # [tb, n_out]
    o_ref[...] = (y + b3_ref[...]).astype(o_ref.dtype)


def _pick_tb(batch):
    """Per-generation batch tile: 2+ parallel blocks on dual-TC v7x, one grid
    step on single-TC v5e/v6e (per-step overhead dominates at this size)."""
    kind = ""
    try:
        kind = jax.devices()[0].device_kind.lower()
    except Exception:
        pass
    if "v7" in kind:          # 2 TensorCores per chip: shard batch blocks
        return 512
    # single-TC chips: collapse to one grid step, multiple of 512 for MXU feed
    return int(min(pl.cdiv(batch, 512) * 512, 4096))


def mlp_forward(x, w1, b1, w2, b2, w3, b3, *, tb=None):
    """x: [batch, n_input] f32; weights in PyTorch layout [out, in]; biases [out]."""
    batch, n_input = x.shape
    n_hidden = w1.shape[0]
    n_output = w3.shape[0]
    if tb is None:
        tb = _pick_tb(batch)

    # One-time parameter packing (bf16 MXU operands; biases stay f32).
    w1b, w2b, w3b = (w.astype(jnp.bfloat16) for w in (w1, w2, w3))
    b1c = b1.reshape(n_hidden, 1).astype(jnp.float32)   # broadcasts over lanes
    b2c = b2.reshape(n_hidden, 1).astype(jnp.float32)
    b3c = b3.reshape(1, n_output).astype(jnp.float32)   # broadcasts over rows

    grid = (pl.cdiv(batch, tb),)                         # partial last block is masked
    const = lambda shape: pl.BlockSpec(shape, lambda i: (0, 0))  # VMEM-resident

    flops = 2 * batch * (n_input * n_hidden + n_hidden * n_hidden
                         + n_hidden * n_output)
    bytes_accessed = (x.size * 4 + batch * n_output * 4
                      + (w1b.size + w2b.size + w3b.size) * 2
                      + (b1c.size + b2c.size + b3c.size) * 4)

    return pl.pallas_call(
        mlp_kernel,
        out_shape=jax.ShapeDtypeStruct((batch, n_output), jnp.float32),
        grid=grid,
        in_specs=[
            pl.BlockSpec((tb, n_input), lambda i: (i, 0)),
            const((n_hidden, n_input)), const((n_hidden, 1)),
            const((n_hidden, n_hidden)), const((n_hidden, 1)),
            const((n_output, n_hidden)), const((1, n_output)),
        ],
        out_specs=pl.BlockSpec((tb, n_output), lambda i: (i, 0)),
        compiler_params=pltpu.CompilerParams(
            dimension_semantics=("parallel",)),
        cost_estimate=pl.CostEstimate(
            flops=flops,
            transcendentals=2 * batch * n_hidden,
            bytes_accessed=bytes_accessed),
    )(x, w1b, b1c, w2b, b2c, w3b, b3c)


def init_params(key, n_input, n_hidden, n_output):
    # Deterministic init mimicking torch.nn.Linear's U(-1/sqrt(fan_in), 1/sqrt(fan_in)).
    ks = jax.random.split(key, 6)

    def lin(kw, kb, fan_in, fan_out):
        bound = 1.0 / jnp.sqrt(fan_in)
        w = jax.random.uniform(kw, (fan_out, fan_in), jnp.float32, -bound, bound)
        b = jax.random.uniform(kb, (fan_out,), jnp.float32, -bound, bound)
        return w, b

    w1, b1 = lin(ks[0], ks[1], n_input, n_hidden)
    w2, b2 = lin(ks[2], ks[3], n_hidden, n_hidden)
    w3, b3 = lin(ks[4], ks[5], n_hidden, n_output)
    return w1, b1, w2, b2, w3, b3


def reference(x, w1, b1, w2, b2, w3, b3):
    # Matches the kernel's numerics: bf16 MXU operands, f32 accumulation,
    # bias add + sigmoid in f32.
    def lin(a, w, b):
        return jnp.dot(a.astype(jnp.bfloat16), w.T.astype(jnp.bfloat16),
                       preferred_element_type=jnp.float32) + b
    h = jax.nn.sigmoid(lin(x, w1, b1))
    h = jax.nn.sigmoid(lin(h, w2, b2))
    return lin(h, w3, b3)


if __name__ == "__main__":
    n_input, n_hidden, n_output = 16, 32, 8
    batch = 1000  # deliberately not a multiple of the batch tile (exercises masking)

    key = jax.random.PRNGKey(0)
    k_x, k_p = jax.random.split(key)
    x = jax.random.normal(k_x, (batch, n_input), jnp.float32)
    params = init_params(k_p, n_input, n_hidden, n_output)

    fwd = jax.jit(mlp_forward)  # fuses the tiny one-time param casts into one dispatch
    y = jax.block_until_ready(fwd(x, *params))
    y_ref = reference(x, *params)

    assert y.shape == (batch, n_output)
    assert jnp.allclose(y, y_ref, atol=1e-2, rtol=1e-2), float(
        jnp.max(jnp.abs(y - y_ref)))
    print("KERNEL_OK")
</pallas_src>

<mosaic_0001>
module attributes {stable_mosaic.version = 11 : i64} {
  func.func @mlp_kernel(%arg0: i32, %arg1: memref<1024x16xf32, #tpu.memory_space<vmem>>, %arg2: memref<32x16xbf16, #tpu.memory_space<vmem>>, %arg3: memref<32x1xf32, #tpu.memory_space<vmem>>, %arg4: memref<32x32xbf16, #tpu.memory_space<vmem>>, %arg5: memref<32x1xf32, #tpu.memory_space<vmem>>, %arg6: memref<8x32xbf16, #tpu.memory_space<vmem>>, %arg7: memref<1x8xf32, #tpu.memory_space<vmem>>, %arg8: memref<1024x8xf32, #tpu.memory_space<vmem>>) attributes {dimension_semantics = [#tpu.dimension_semantics<parallel>], iteration_bounds = array<i64: 1>, scalar_prefetch = 0 : i64, scratch_operands = 0 : i64, tpu.core_type = #tpu.core_type<tc>, window_params = [{transform_indices = @transform_0, window_bounds = array<i64: 1024, 16>}, {pipeline_mode = #tpu.pipeline_mode<synchronous>, transform_indices = @transform_1, window_bounds = array<i64: 32, 16>}, {pipeline_mode = #tpu.pipeline_mode<synchronous>, transform_indices = @transform_2, window_bounds = array<i64: 32, 1>}, {pipeline_mode = #tpu.pipeline_mode<synchronous>, transform_indices = @transform_3, window_bounds = array<i64: 32, 32>}, {pipeline_mode = #tpu.pipeline_mode<synchronous>, transform_indices = @transform_4, window_bounds = array<i64: 32, 1>}, {pipeline_mode = #tpu.pipeline_mode<synchronous>, transform_indices = @transform_5, window_bounds = array<i64: 8, 32>}, {pipeline_mode = #tpu.pipeline_mode<synchronous>, transform_indices = @transform_6, window_bounds = array<i64: 1, 8>}, {transform_indices = @transform_7, window_bounds = array<i64: 1024, 8>}]} {
    %c0 = arith.constant 0 : index
    %c0_0 = arith.constant 0 : index
    %0 = vector.load %arg1[%c0, %c0_0] : memref<1024x16xf32, #tpu.memory_space<vmem>>, vector<1024x16xf32>
    %1 = arith.truncf %0 : vector<1024x16xf32> to vector<1024x16xbf16>
    %c0_1 = arith.constant 0 : index
    %c0_2 = arith.constant 0 : index
    %2 = vector.load %arg2[%c0_1, %c0_2] : memref<32x16xbf16, #tpu.memory_space<vmem>>, vector<32x16xbf16>
    %cst = arith.constant dense<0.000000e+00> : vector<32x1024xf32>
    %3 = tpu.matmul %2, %1, %cst {dimension_numbers = #tpu.dot_dimension_numbers<[1], [1], [0], [0], [0, 0, 1, 0], [], []>} : vector<32x16xbf16>, vector<1024x16xbf16>, vector<32x1024xf32> -> vector<32x1024xf32>
    %c0_3 = arith.constant 0 : index
    %c0_4 = arith.constant 0 : index
    %4 = vector.load %arg3[%c0_3, %c0_4] : memref<32x1xf32, #tpu.memory_space<vmem>>, vector<32x1xf32>
    %5 = vector.broadcast %4 : vector<32x1xf32> to vector<32x1024xf32>
    %6 = arith.addf %3, %5 : vector<32x1024xf32>
    %cst_5 = arith.constant 5.000000e-01 : f32
    %7 = vector.broadcast %cst_5 : f32 to vector<32x1024xf32>
    %8 = arith.mulf %7, %6 : vector<32x1024xf32>
    %9 = math.tanh %8 : vector<32x1024xf32>
    %cst_6 = arith.constant 5.000000e-01 : f32
    %10 = vector.broadcast %cst_6 : f32 to vector<32x1024xf32>
    %11 = arith.mulf %10, %9 : vector<32x1024xf32>
    %cst_7 = arith.constant 5.000000e-01 : f32
    %12 = vector.broadcast %cst_7 : f32 to vector<32x1024xf32>
    %13 = arith.addf %11, %12 : vector<32x1024xf32>
    %c0_8 = arith.constant 0 : index
    %c0_9 = arith.constant 0 : index
    %14 = vector.load %arg4[%c0_8, %c0_9] : memref<32x32xbf16, #tpu.memory_space<vmem>>, vector<32x32xbf16>
    %15 = arith.truncf %13 : vector<32x1024xf32> to vector<32x1024xbf16>
    %cst_10 = arith.constant dense<0.000000e+00> : vector<32x1024xf32>
    %16 = tpu.matmul %14, %15, %cst_10 {dimension_numbers = #tpu.dot_dimension_numbers<[1], [0], [0], [1], [0, 0, 1, 1], [], []>} : vector<32x32xbf16>, vector<32x1024xbf16>, vector<32x1024xf32> -> vector<32x1024xf32>
    %c0_11 = arith.constant 0 : index
    %c0_12 = arith.constant 0 : index
    %17 = vector.load %arg5[%c0_11, %c0_12] : memref<32x1xf32, #tpu.memory_space<vmem>>, vector<32x1xf32>
    %18 = vector.broadcast %17 : vector<32x1xf32> to vector<32x1024xf32>
    %19 = arith.addf %16, %18 : vector<32x1024xf32>
    %cst_13 = arith.constant 5.000000e-01 : f32
    %20 = vector.broadcast %cst_13 : f32 to vector<32x1024xf32>
    %21 = arith.mulf %20, %19 : vector<32x1024xf32>
    %22 = math.tanh %21 : vector<32x1024xf32>
    %cst_14 = arith.constant 5.000000e-01 : f32
    %23 = vector.broadcast %cst_14 : f32 to vector<32x1024xf32>
    %24 = arith.mulf %23, %22 : vector<32x1024xf32>
    %cst_15 = arith.constant 5.000000e-01 : f32
    %25 = vector.broadcast %cst_15 : f32 to vector<32x1024xf32>
    %26 = arith.addf %24, %25 : vector<32x1024xf32>
    %27 = arith.truncf %26 : vector<32x1024xf32> to vector<32x1024xbf16>
    %c0_16 = arith.constant 0 : index
    %c0_17 = arith.constant 0 : index
    %28 = vector.load %arg6[%c0_16, %c0_17] : memref<8x32xbf16, #tpu.memory_space<vmem>>, vector<8x32xbf16>
    %cst_18 = arith.constant dense<0.000000e+00> : vector<1024x8xf32>
    %29 = tpu.matmul %27, %28, %cst_18 {dimension_numbers = #tpu.dot_dimension_numbers<[0], [1], [1], [0], [0, 1, 1, 0], [], []>} : vector<32x1024xbf16>, vector<8x32xbf16>, vector<1024x8xf32> -> vector<1024x8xf32>
    %c0_19 = arith.constant 0 : index
    %c0_20 = arith.constant 0 : index
    %30 = vector.load %arg7[%c0_19, %c0_20] : memref<1x8xf32, #tpu.memory_space<vmem>>, vector<1x8xf32>
    %31 = vector.broadcast %30 : vector<1x8xf32> to vector<1024x8xf32>
    %32 = arith.addf %29, %31 : vector<1024x8xf32>
    %c0_21 = arith.constant 0 : index
    %c0_22 = arith.constant 0 : index
    %33 = vector.load %arg8[%c0_21, %c0_22] : memref<1024x8xf32, #tpu.memory_space<vmem>>, vector<1024x8xf32>
    tpu.vector_store %arg8[%c0_21, %c0_22], %32 {strides = array<i32>} : memref<1024x8xf32, #tpu.memory_space<vmem>>, vector<1024x8xf32>,
    return
  }
  func.func @transform_0(%arg0: i32) -> (i32, i32) {
    %c0_i32 = arith.constant 0 : i32
    %c0_i32_0 = arith.constant 0 : i32
    return %arg0, %c0_i32 : i32, i32
  }
  func.func @transform_1(%arg0: i32) -> (i32, i32) {
    %c0_i32 = arith.constant 0 : i32
    %c0_i32_0 = arith.constant 0 : i32
    %c0_i32_1 = arith.constant 0 : i32
    return %c0_i32, %c0_i32_0 : i32, i32
  }
  func.func @transform_2(%arg0: i32) -> (i32, i32) {
    %c0_i32 = arith.constant 0 : i32
    %c0_i32_0 = arith.constant 0 : i32
    %c0_i32_1 = arith.constant 0 : i32
    return %c0_i32, %c0_i32_0 : i32, i32
  }
  func.func @transform_3(%arg0: i32) -> (i32, i32) {
    %c0_i32 = arith.constant 0 : i32
    %c0_i32_0 = arith.constant 0 : i32
    %c0_i32_1 = arith.constant 0 : i32
    return %c0_i32, %c0_i32_0 : i32, i32
  }
  func.func @transform_4(%arg0: i32) -> (i32, i32) {
    %c0_i32 = arith.constant 0 : i32
    %c0_i32_0 = arith.constant 0 : i32
    %c0_i32_1 = arith.constant 0 : i32
    return %c0_i32, %c0_i32_0 : i32, i32
  }
  func.func @transform_5(%arg0: i32) -> (i32, i32) {
    %c0_i32 = arith.constant 0 : i32
    %c0_i32_0 = arith.constant 0 : i32
    %c0_i32_1 = arith.constant 0 : i32
    return %c0_i32, %c0_i32_0 : i32, i32
  }
  func.func @transform_6(%arg0: i32) -> (i32, i32) {
    %c0_i32 = arith.constant 0 : i32
    %c0_i32_0 = arith.constant 0 : i32
    %c0_i32_1 = arith.constant 0 : i32
    return %c0_i32, %c0_i32_0 : i32, i32
  }
  func.func @transform_7(%arg0: i32) -> (i32, i32) {
    %c0_i32 = arith.constant 0 : i32
    %c0_i32_0 = arith.constant 0 : i32
    return %arg0, %c0_i32 : i32, i32
  }
}

</mosaic_0001>

<bundles_post_ra>
// kernel: mlp_forward.1
= control target key start
LH: loop header
LB: loop body
LE: loop exit
PB: predicated region body
PF: predicated region fallthrough
CT: control target
= control target key end

     0   :  { %vm257_vm0 = vcmask 130048   ;;  %vm790_vm1 = vcmask 261120   ;;  %vm1718_vm2 = vcmask 64512   ;;  %s4176_s0 = inlined_call_operand.vmem [shape: f32[1000,16], index: 0, kind: input, shape index: {}]   ;;  %s4177_s1 = inlined_call_operand.vmem [shape: bf16[32,16], index: 1, kind: input, shape index: {}]   ;;  %s4178_s2 = inlined_call_operand.vmem [shape: f32[32,1], index: 2, kind: input, shape index: {}]   ;;  %s4179_s3 = inlined_call_operand.vmem [shape: bf16[32,32], index: 3, kind: input, shape index: {}]   ;;  %s4180_s4 = inlined_call_operand.vmem [shape: f32[32,1], index: 4, kind: input, shape index: {}]   ;;  %s4181_s5 = inlined_call_operand.vmem [shape: bf16[8,32], index: 5, kind: input, shape index: {}]   ;;  %s4182_s6 = inlined_call_operand.vmem [shape: f32[1,8], index: 6, kind: input, shape index: {}]   ;;  %s4183_s7 = inlined_call_operand.vmem [shape: f32[1000,8], index: 7, kind: output, shape index: {}]  }
   0x1   :  { %v41_v0 = vld [vmem:[%s4176_s0 + $0x70] sm:$0xff]  ;;  %v42_v1 = vld [vmem:[%s4176_s0 + $0x78] sm:$0xff]  ;;  %v39_v11 = vld [vmem:[%s4176_s0 + $0x60] sm:$0xff] }
   0x2   :  { %v57_v2 = vld [vmem:[%s4176_s0 + $0xf0] sm:$0xff]  ;;  %v162_v3 = vpack.c.bf16 %v42_v1, %v41_v0  ;;  %v58_v4 = vld [vmem:[%s4176_s0 + $0xf8] sm:$0xff]  ;;  %v40_v14 = vld [vmem:[%s4176_s0 + $0x68] sm:$0xff] }
   0x3   :  { %v73_v5 = vld [vmem:[%s4176_s0 + $0x170] sm:$0xff]  ;;  %v74_v6 = vld [vmem:[%s4176_s0 + $0x178] sm:$0xff]  ;;  %v170_v7 = vpack.c.bf16 %v58_v4, %v57_v2  ;;  %v55_v15 = vld [vmem:[%s4176_s0 + $0xe0] sm:$0xff]  ;;  %v161_v23 = vpack.c.bf16 %v40_v14, %v39_v11 }
   0x4   :  { %v178_v8 = vpack.c.bf16 %v74_v6, %v73_v5  ;;  %v89_v9 = vld [vmem:[%s4176_s0 + $0x1f0] sm:$0xff]  ;;  %v90_v10 = vld [vmem:[%s4176_s0 + $0x1f8] sm:$0xff]  ;;  %v286_v12 = vsel %vm257_vm0, %v162_v3, 0  ;;  %v56_v16 = vld [vmem:[%s4176_s0 + $0xe8] sm:$0xff] }
   0x5   :  { %v186_v13 = vpack.c.bf16 %v90_v10, %v89_v9  ;;  %456 = vmatpush.bf16.xpose.msra.mxu0 %v286_v12  ;;  %v310_v17 = vsel %vm257_vm0, %v170_v7, 0  ;;  %v71_v19 = vld [vmem:[%s4176_s0 + $0x160] sm:$0xff]  ;;  %v72_v20 = vld [vmem:[%s4176_s0 + $0x168] sm:$0xff]  ;;  %v169_v25 = vpack.c.bf16 %v56_v16, %v55_v15  ;;  %v283_v28 = vsel %vm257_vm0, %v161_v23, 0  ;;  %v37_v31 = vld [vmem:[%s4176_s0 + $0x50] sm:$0xff] }
   0x6   :  { %v334_v18 = vsel %vm257_vm0, %v178_v8, 0  ;;  %v87_v21 = vld [vmem:[%s4176_s0 + $0x1e0] sm:$0xff]  ;;  %475 = vmatpush.bf16.xpose.msra.mxu1 %v310_v17  ;;  %v88_v24 = vld [vmem:[%s4176_s0 + $0x1e8] sm:$0xff]  ;;  %v177_v26 = vpack.c.bf16 %v72_v20, %v71_v19  ;;  %v38_v32 = vld [vmem:[%s4176_s0 + $0x58] sm:$0xff] }
   0x7   :  { %494 = vmatpush.bf16.xpose.msra.mxu2 %v334_v18  ;;  %v358_v22 = vsel %vm257_vm0, %v186_v13, 0  ;;  %v185_v27 = vpack.c.bf16 %v88_v24, %v87_v21  ;;  %v307_v29 = vsel %vm257_vm0, %v169_v25, 0  ;;  %v53_v33 = vld [vmem:[%s4176_s0 + $0xd0] sm:$0xff]  ;;  %v54_v35 = vld [vmem:[%s4176_s0 + $0xd8] sm:$0xff]  ;;  %v160_v40 = vpack.c.bf16 %v38_v32, %v37_v31  ;;  %v35_v47 = vld [vmem:[%s4176_s0 + $0x40] sm:$0xff] }
   0x8   :  { %513 = vmatpush.bf16.xpose.msra.mxu3 %v358_v22  ;;  %v331_v30 = vsel %vm257_vm0, %v177_v26, 0  ;;  %v69_v36 = vld [vmem:[%s4176_s0 + $0x150] sm:$0xff]  ;;  %v70_v37 = vld [vmem:[%s4176_s0 + $0x158] sm:$0xff]  ;;  %v168_v41 = vpack.c.bf16 %v54_v35, %v53_v33  ;;  %v36_v48 = vld [vmem:[%s4176_s0 + $0x48] sm:$0xff] }
   0x9   :  { %v355_v34 = vsel %vm257_vm0, %v185_v27, 0  ;;  %v85_v38 = vld [vmem:[%s4176_s0 + $0x1d0] sm:$0xff]  ;;  %v86_v39 = vld [vmem:[%s4176_s0 + $0x1d8] sm:$0xff]  ;;  %v176_v42 = vpack.c.bf16 %v70_v37, %v69_v36  ;;  %v280_v44 = vsel %vm257_vm0, %v160_v40, 0  ;;  %v51_v49 = vld [vmem:[%s4176_s0 + $0xc0] sm:$0xff]  ;;  %v159_v56 = vpack.c.bf16 %v36_v48, %v35_v47 }
   0xa   :  { %v184_v43 = vpack.c.bf16 %v86_v39, %v85_v38  ;;  %v304_v45 = vsel %vm257_vm0, %v168_v41, 0  ;;  %v52_v51 = vld [vmem:[%s4176_s0 + $0xc8] sm:$0xff]  ;;  %v67_v52 = vld [vmem:[%s4176_s0 + $0x140] sm:$0xff]  ;;  %v33_v63 = vld [vmem:[%s4176_s0 + $0x30] sm:$0xff] }
   0xb   :  { %v328_v46 = vsel %vm257_vm0, %v176_v42, 0  ;;  %v68_v53 = vld [vmem:[%s4176_s0 + $0x148] sm:$0xff]  ;;  %v83_v54 = vld [vmem:[%s4176_s0 + $0x1c0] sm:$0xff]  ;;  %v167_v57 = vpack.c.bf16 %v52_v51, %v51_v49  ;;  %v277_v60 = vsel %vm257_vm0, %v159_v56, 0  ;;  %v34_v0 = vld [vmem:[%s4176_s0 + $0x38] sm:$0xff] }
   0xc   :  { %v352_v50 = vsel %vm257_vm0, %v184_v43, 0  ;;  %v84_v55 = vld [vmem:[%s4176_s0 + $0x1c8] sm:$0xff]  ;;  %v175_v58 = vpack.c.bf16 %v68_v53, %v67_v52  ;;  %v49_v1 = vld [vmem:[%s4176_s0 + $0xb0] sm:$0xff]  ;;  %v50_v3 = vld [vmem:[%s4176_s0 + $0xb8] sm:$0xff]  ;;  %v158_v8 = vpack.c.bf16 %v34_v0, %v33_v63 }
   0xd   :  { %457 = vmatpush.bf16.xpose.msra.mxu0 %v283_v28  ;;  %v183_v59 = vpack.c.bf16 %v84_v55, %v83_v54  ;;  %v301_v61 = vsel %vm257_vm0, %v167_v57, 0  ;;  %v65_v4 = vld [vmem:[%s4176_s0 + $0x130] sm:$0xff]  ;;  %v66_v5 = vld [vmem:[%s4176_s0 + $0x138] sm:$0xff]  ;;  %v166_v9 = vpack.c.bf16 %v50_v3, %v49_v1  ;;  %v31_v15 = vld [vmem:[%s4176_s0 + $0x20] sm:$0xff] }
   0xe   :  { %476 = vmatpush.bf16.xpose.msra.mxu1 %v307_v29  ;;  %v325_v62 = vsel %vm257_vm0, %v175_v58, 0  ;;  %v81_v6 = vld [vmem:[%s4176_s0 + $0x1b0] sm:$0xff]  ;;  %v82_v7 = vld [vmem:[%s4176_s0 + $0x1b8] sm:$0xff]  ;;  %v174_v10 = vpack.c.bf16 %v66_v5, %v65_v4  ;;  %v274_v12 = vsel %vm257_vm0, %v158_v8, 0  ;;  %v32_v16 = vld [vmem:[%s4176_s0 + $0x28] sm:$0xff] }
   0xf   :  { %495 = vmatpush.bf16.xpose.msra.mxu2 %v331_v30  ;;  %v349_v2 = vsel %vm257_vm0, %v183_v59, 0  ;;  %v182_v11 = vpack.c.bf16 %v82_v7, %v81_v6  ;;  %v298_v13 = vsel %vm257_vm0, %v166_v9, 0  ;;  %v47_v17 = vld [vmem:[%s4176_s0 + $0xa0] sm:$0xff]  ;;  %v48_v19 = vld [vmem:[%s4176_s0 + $0xa8] sm:$0xff]  ;;  %v157_v24 = vpack.c.bf16 %v32_v16, %v31_v15  ;;  %v29_v31 = vld [vmem:[%s4176_s0 + $0x10] sm:$0xff] }
  0x10   :  { %514 = vmatpush.bf16.xpose.msra.mxu3 %v355_v34  ;;  %v322_v14 = vsel %vm257_vm0, %v174_v10, 0  ;;  %v63_v20 = vld [vmem:[%s4176_s0 + $0x120] sm:$0xff]  ;;  %v64_v21 = vld [vmem:[%s4176_s0 + $0x128] sm:$0xff]  ;;  %v165_v25 = vpack.c.bf16 %v48_v19, %v47_v17  ;;  %v30_v32 = vld [vmem:[%s4176_s0 + $0x18] sm:$0xff]  ;;  %v2637_v9 = vmov 0  }
  0x11   :  { %v346_v18 = vsel %vm257_vm0, %v182_v11, 0  ;;  %v79_v22 = vld [vmem:[%s4176_s0 + $0x1a0] sm:$0xff]  ;;  %v80_v23 = vld [vmem:[%s4176_s0 + $0x1a8] sm:$0xff]  ;;  %v173_v26 = vpack.c.bf16 %v64_v21, %v63_v20  ;;  %v271_v28 = vsel %vm257_vm0, %v157_v24, 0  ;;  %v45_v33 = vld [vmem:[%s4176_s0 + $0x90] sm:$0xff]  ;;  %v156_v40 = vpack.c.bf16 %v30_v32, %v29_v31  ;;  %2504 = vset.pattern.permute.xlu0 %v2637_v9  ;;  %2505 = vset.pattern.permute.xlu1 %v2637_v9 }
  0x12   :  { %v181_v27 = vpack.c.bf16 %v80_v23, %v79_v22  ;;  %v295_v29 = vsel %vm257_vm0, %v165_v25, 0  ;;  %v46_v35 = vld [vmem:[%s4176_s0 + $0x98] sm:$0xff]  ;;  %v61_v36 = vld [vmem:[%s4176_s0 + $0x110] sm:$0xff]  ;;  %v43_v49 = vld [vmem:[%s4176_s0 + $0x80] sm:$0xff]  ;;  %2506 = vset.pattern.permute.xlu2 %v2637_v9 }
  0x13   :  { %v319_v30 = vsel %vm257_vm0, %v173_v26, 0  ;;  %v62_v37 = vld [vmem:[%s4176_s0 + $0x118] sm:$0xff]  ;;  %v77_v38 = vld [vmem:[%s4176_s0 + $0x190] sm:$0xff]  ;;  %v164_v41 = vpack.c.bf16 %v46_v35, %v45_v33  ;;  %v59_v51 = vld [vmem:[%s4176_s0 + $0x100] sm:$0xff] }
  0x14   :  { %v343_v34 = vsel %vm257_vm0, %v181_v27, 0  ;;  %v78_v39 = vld [vmem:[%s4176_s0 + $0x198] sm:$0xff]  ;;  %v172_v42 = vpack.c.bf16 %v62_v37, %v61_v36  ;;  %v60_v53 = vld [vmem:[%s4176_s0 + $0x108] sm:$0xff]  ;;  %v75_v54 = vld [vmem:[%s4176_s0 + $0x180] sm:$0xff] }
  0x15   :  { %458 = vmatpush.bf16.xpose.msra.mxu0 %v280_v44  ;;  %v180_v43 = vpack.c.bf16 %v78_v39, %v77_v38  ;;  %v268_v44 = vsel %vm257_vm0, %v156_v40, 0  ;;  %v292_v47 = vsel %vm257_vm0, %v164_v41, 0  ;;  %v76_v55 = vld [vmem:[%s4176_s0 + $0x188] sm:$0xff]  ;;  %v105_v56 = vld [vmem:[%s4176_s0 + $0x270] sm:$0xff]  ;;  %v106_v57 = vld [vmem:[%s4176_s0 + $0x278] sm:$0xff]  ;;  %v171_v0 = vpack.c.bf16 %v60_v53, %v59_v51 }
  0x16   :  { %477 = vmatpush.bf16.xpose.msra.mxu1 %v304_v45  ;;  %v27_v45 = vld [vmem:[%s4176_s0] sm:$0xff]  ;;  %v316_v48 = vsel %vm257_vm0, %v172_v42, 0  ;;  %v121_v58 = vld [vmem:[%s4176_s0 + $0x2f0] sm:$0xff]  ;;  %v179_v3 = vpack.c.bf16 %v76_v55, %v75_v54  ;;  %v194_v4 = vpack.c.bf16 %v106_v57, %v105_v56  ;;  %v104_v17 = vld [vmem:[%s4176_s0 + $0x268] sm:$0xff] }
  0x17   :  { %496 = vmatpush.bf16.xpose.msra.mxu2 %v328_v46  ;;  %v28_v46 = vld [vmem:[%s4176_s0 + $0x8] sm:$0xff]  ;;  %v340_v52 = vsel %vm257_vm0, %v180_v43, 0  ;;  %v153_v1 = vld [vmem:[%s4176_s0 + $0x3f0] sm:$0xff]  ;;  %v313_v11 = vsel %vm257_vm0, %v171_v0, 0  ;;  %v103_v16 = vld [vmem:[%s4176_s0 + $0x260] sm:$0xff] }
  0x18   :  { %515 = vmatpush.bf16.xpose.msra.mxu3 %v352_v50  ;;  %v44_v50 = vld [vmem:[%s4176_s0 + $0x88] sm:$0xff]  ;;  %v155_v59 = vpack.c.bf16 %v28_v46, %v27_v45  ;;  %v135_v21 = vld [vmem:[%s4176_s0 + $0x360] sm:$0xff]  ;;  %v193_v26 = vpack.c.bf16 %v104_v17, %v103_v16  ;;  %v101_v35 = vld [vmem:[%s4176_s0 + $0x250] sm:$0xff] }
  0x19   :  { %v163_v63 = vpack.c.bf16 %v44_v50, %v43_v49  ;;  %v120_v20 = vld [vmem:[%s4176_s0 + $0x2e8] sm:$0xff]  ;;  %v151_v23 = vld [vmem:[%s4176_s0 + $0x3e0] sm:$0xff]  ;;  %v102_v36 = vld [vmem:[%s4176_s0 + $0x258] sm:$0xff] }
  0x1a   :  { %v265_v7 = vsel %vm257_vm0, %v155_v59, 0  ;;  %v136_v22 = vld [vmem:[%s4176_s0 + $0x368] sm:$0xff]  ;;  %v2957_v25 = vld [vmem:[%s4177_s1] sm:$0xff]  ;;  %v379_v32 = vsel %vm257_vm0, %v193_v26, 0  ;;  %v117_v37 = vld [vmem:[%s4176_s0 + $0x2d0] sm:$0xff] }
  0x1b   :  { %v289_v10 = vsel %vm257_vm0, %v163_v63, 0  ;;  %v152_v24 = vld [vmem:[%s4176_s0 + $0x3e8] sm:$0xff]  ;;  %v118_v39 = vld [vmem:[%s4176_s0 + $0x2d8] sm:$0xff]  ;;  %v133_v40 = vld [vmem:[%s4176_s0 + $0x350] sm:$0xff] }
  0x1c   :  { %v217_v31 = vpack.c.bf16 %v152_v24, %v151_v23  ;;  %v134_v41 = vld [vmem:[%s4176_s0 + $0x358] sm:$0xff]  ;;  %v149_v42 = vld [vmem:[%s4176_s0 + $0x3d0] sm:$0xff]  ;;  %v200_v45 = vpack.c.bf16 %v118_v39, %v117_v37  ;;  %v99_v53 = vld [vmem:[%s4176_s0 + $0x240] sm:$0xff] }
  0x1d   :  { %459 = vmatpush.bf16.xpose.msra.mxu0 %v277_v60  ;;  %v122_v60 = vld [vmem:[%s4176_s0 + $0x2f8] sm:$0xff]  ;;  %v208_v46 = vpack.c.bf16 %v134_v41, %v133_v40  ;;  %v100_v54 = vld [vmem:[%s4176_s0 + $0x248] sm:$0xff]  ;;  %v115_v55 = vld [vmem:[%s4176_s0 + $0x2c0] sm:$0xff] }
  0x1e   :  { %478 = vmatpush.bf16.xpose.msra.mxu1 %v301_v61  ;;  %v137_v61 = vld [vmem:[%s4176_s0 + $0x370] sm:$0xff]  ;;  %v202_v5 = vpack.c.bf16 %v122_v60, %v121_v58  ;;  %v451_v38 = vsel %vm257_vm0, %v217_v31, 0  ;;  %v150_v43 = vld [vmem:[%s4176_s0 + $0x3d8] sm:$0xff]  ;;  %v400_v51 = vsel %vm257_vm0, %v200_v45, 0  ;;  %v116_v57 = vld [vmem:[%s4176_s0 + $0x2c8] sm:$0xff]  ;;  %v191_v63 = vpack.c.bf16 %v100_v54, %v99_v53 }
  0x1f   :  { %497 = vmatpush.bf16.xpose.msra.mxu2 %v325_v62  ;;  %v138_v62 = vld [vmem:[%s4176_s0 + $0x378] sm:$0xff]  ;;  %v216_v49 = vpack.c.bf16 %v150_v43, %v149_v42  ;;  %v131_v58 = vld [vmem:[%s4176_s0 + $0x340] sm:$0xff]  ;;  %v132_v59 = vld [vmem:[%s4176_s0 + $0x348] sm:$0xff]  ;;  %v199_v0 = vpack.c.bf16 %v116_v57, %v115_v55 }
  0x20   :  { %516 = vmatpush.bf16.xpose.msra.mxu3 %v349_v2  ;;  %v154_v2 = vld [vmem:[%s4176_s0 + $0x3f8] sm:$0xff]  ;;  %v210_v6 = vpack.c.bf16 %v138_v62, %v137_v61  ;;  %v147_v60 = vld [vmem:[%s4176_s0 + $0x3c0] sm:$0xff]  ;;  %v148_v61 = vld [vmem:[%s4176_s0 + $0x3c8] sm:$0xff] }
  0x21   :  { %v218_v8 = vpack.c.bf16 %v154_v2, %v153_v1  ;;  %v448_v56 = vsel %vm257_vm0, %v216_v49, 0  ;;  %v3038_v62 = vld [vmem:[%s4177_s1 + $0x8] sm:$0xff]  ;;  %v207_v1 = vpack.c.bf16 %v132_v59, %v131_v58  ;;  %v215_v2 = vpack.c.bf16 %v148_v61, %v147_v60  ;;  %v111_v26 = vld [vmem:[%s4176_s0 + $0x2a0] sm:$0xff]  ;;  %v759_v31 = vld [vmem:[%s4180_s4 + $0x18] sm:$0xff] }
  0x22   :  { %v430_v15 = vsel %vm257_vm0, %v210_v6, 0  ;;  %v97_v6 = vld [vmem:[%s4176_s0 + $0x230] sm:$0xff]  ;;  %v96_v24 = vld [vmem:[%s4176_s0 + $0x228] sm:$0xff]  ;;  %v94_v42 = vld [vmem:[%s4176_s0 + $0x218] sm:$0xff] }
  0x23   :  { %v454_v19 = vsel %vm257_vm0, %v218_v8, 0  ;;  %v113_v8 = vld [vmem:[%s4176_s0 + $0x2b0] sm:$0xff]  ;;  %v445_v9 = vsel %vm257_vm0, %v215_v2, 0  ;;  %v110_v45 = vld [vmem:[%s4176_s0 + $0x298] sm:$0xff]  ;;  %v91_v57 = vld [vmem:[%s4176_s0 + $0x200] sm:$0xff] }
  0x24   :  { %v93_v41 = vld [vmem:[%s4176_s0 + $0x210] sm:$0xff]  ;;  %v142_v49 = vld [vmem:[%s4176_s0 + $0x398] sm:$0xff]  ;;  %v92_v58 = vld [vmem:[%s4176_s0 + $0x208] sm:$0xff] }
  0x25   :  { %460 = vmatpush.bf16.xpose.msra.mxu0 %v274_v12  ;;  %v337_v12 = vsel %vm257_vm0, %v179_v3, 0  ;;  %v373_v3 = vsel %vm257_vm0, %v191_v63, 0  ;;  %v109_v43 = vld [vmem:[%s4176_s0 + $0x290] sm:$0xff]  ;;  %v107_v59 = vld [vmem:[%s4176_s0 + $0x280] sm:$0xff]  ;;  %v108_v61 = vld [vmem:[%s4176_s0 + $0x288] sm:$0xff] }
  0x26   :  { %479 = vmatpush.bf16.xpose.msra.mxu1 %v298_v13  ;;  %v382_v13 = vsel %vm257_vm0, %v194_v4, 0  ;;  %v397_v4 = vsel %vm257_vm0, %v199_v0, 0  ;;  %v123_v63 = vld [vmem:[%s4176_s0 + $0x300] sm:$0xff]  ;;  %v124_v0 = vld [vmem:[%s4176_s0 + $0x308] sm:$0xff] }
  0x27   :  { %498 = vmatpush.bf16.xpose.msra.mxu2 %v322_v14  ;;  %v406_v14 = vsel %vm257_vm0, %v202_v5, 0  ;;  %v421_v5 = vsel %vm257_vm0, %v207_v1, 0  ;;  %v139_v1 = vld [vmem:[%s4176_s0 + $0x380] sm:$0xff]  ;;  %v140_v2 = vld [vmem:[%s4176_s0 + $0x388] sm:$0xff] }
  0x28   :  { %517 = vmatpush.bf16.xpose.msra.mxu3 %v346_v18  ;;  %v119_v18 = vld [vmem:[%s4176_s0 + $0x2e0] sm:$0xff] }
  0x29   :  { %v201_v27 = vpack.c.bf16 %v120_v20, %v119_v18  ;;  %v758_v18 = vld [vmem:[%s4180_s4 + $0x10] sm:$0xff] }
  0x2b   :  { %v403_v33 = vsel %vm257_vm0, %v201_v27, 0  ;;  %v112_v27 = vld [vmem:[%s4176_s0 + $0x2a8] sm:$0xff] }
  0x2d   :  { %461 = vmatpush.bf16.xpose.msra.mxu0 %v271_v28  ;;  %v209_v28 = vpack.c.bf16 %v136_v22, %v135_v21  ;;  %v95_v21 = vld [vmem:[%s4176_s0 + $0x220] sm:$0xff] }
  0x2e   :  { %480 = vmatpush.bf16.xpose.msra.mxu1 %v295_v29  ;;  %v225_v29 = vld [vmem:[%s4178_s2 + $0x10] sm:$0xff] }
  0x2f   :  { %499 = vmatpush.bf16.xpose.msra.mxu2 %v319_v30  ;;  %v223_v30 = vld [vmem:[%s4178_s2] sm:$0xff]  ;;  %239 = vperm.xlu0 %2504, %v225_v29  }
  0x30   :  { %518 = vmatpush.bf16.xpose.msra.mxu3 %v343_v34  ;;  %229 = vperm.xlu1 %2505, %v223_v30   ;;  %v427_v34 = vsel %vm257_vm0, %v209_v28, 0  ;;  %v127_v29 = vld [vmem:[%s4176_s0 + $0x320] sm:$0xff]  ;;  %v128_v30 = vld [vmem:[%s4176_s0 + $0x328] sm:$0xff] }
  0x35   :  { %462 = vmatpush.bf16.xpose.msra.mxu0 %v268_v44  ;;  %v192_v44 = vpack.c.bf16 %v102_v36, %v101_v35  ;;  %v197_v35 = vpack.c.bf16 %v112_v27, %v111_v26  ;;  %v205_v36 = vpack.c.bf16 %v128_v30, %v127_v29 }
  0x36   :  { %481 = vmatpush.bf16.xpose.msra.mxu1 %v292_v47  ;;  %v226_v47 = vld [vmem:[%s4178_s2 + $0x18] sm:$0xff] }
  0x37   :  { %500 = vmatpush.bf16.xpose.msra.mxu2 %v316_v48  ;;  %v224_v48 = vld [vmem:[%s4178_s2 + $0x8] sm:$0xff]  ;;  %244 = vperm.xlu0 %2504, %v226_v47   ;;  %v376_v50 = vsel %vm257_vm0, %v192_v44, 0  ;;  %v391_v39 = vsel %vm257_vm0, %v197_v35, 0  ;;  %v415_v40 = vsel %vm257_vm0, %v205_v36, 0  ;;  %v126_v47 = vld [vmem:[%s4176_s0 + $0x318] sm:$0xff] }
  0x38   :  { %519 = vmatpush.bf16.xpose.msra.mxu3 %v340_v52  ;;  %234 = vperm.xlu1 %2505, %v224_v48   ;;  %v424_v52 = vsel %vm257_vm0, %v208_v46, 0  ;;  %v125_v46 = vld [vmem:[%s4176_s0 + $0x310] sm:$0xff] }
  0x39   :  { %v141_v48 = vld [vmem:[%s4176_s0 + $0x390] sm:$0xff] }
  0x3a   :  { %v212_v53 = vpack.c.bf16 %v142_v49, %v141_v48 }
  0x3c   :  { %v436_v60 = vsel %vm257_vm0, %v212_v53, 0 }
  0x3d   :  { %463 = vmatpush.bf16.xpose.msra.mxu0 %v265_v7  ;;  %v98_v7 = vld [vmem:[%s4176_s0 + $0x238] sm:$0xff] }
  0x3e   :  { %482 = vmatpush.bf16.xpose.msra.mxu1 %v289_v10  ;;  %v114_v10 = vld [vmem:[%s4176_s0 + $0x2b8] sm:$0xff] }
  0x3f   :  { %501 = vmatpush.bf16.xpose.msra.mxu2 %v313_v11  ;;  %v129_v11 = vld [vmem:[%s4176_s0 + $0x330] sm:$0xff]  ;;  %v198_v16 = vpack.c.bf16 %v114_v10, %v113_v8  ;;  %772 = vperm.xlu0 %2504, %v758_v18  }
  0x40   :  { %520 = vmatpush.bf16.xpose.msra.mxu3 %v337_v12  ;;  %v130_v12 = vld [vmem:[%s4176_s0 + $0x338] sm:$0xff]  ;;  %777 = vperm.xlu1 %2505, %v759_v31  }
  0x41   :  { %v206_v17 = vpack.c.bf16 %v130_v12, %v129_v11  ;;  %v394_v22 = vsel %vm257_vm0, %v198_v16, 0 }
  0x43   :  { %v418_v23 = vsel %vm257_vm0, %v206_v17, 0 }
  0x44   :  { %2392 = vmatmul.msk.bf16.vlgmr.msra.gmra.mxu0 %vm257_vm0, %v2957_v25 }
  0x45   :  { %532 = vmatpush.bf16.xpose.msrb.mxu0 %v382_v13  ;;  %2394 = vmatmul.msk.bf16.vlgmr.msra.gmra.mxu1 %vm257_vm0, %v2957_v25  ;;  %v145_v13 = vld [vmem:[%s4176_s0 + $0x3b0] sm:$0xff] }
  0x46   :  { %551 = vmatpush.bf16.xpose.msrb.mxu1 %v406_v14  ;;  %2396 = vmatmul.msk.bf16.vlgmr.msra.gmra.mxu2 %vm257_vm0, %v2957_v25  ;;  %v146_v14 = vld [vmem:[%s4176_s0 + $0x3b8] sm:$0xff] }
  0x47   :  { %570 = vmatpush.bf16.xpose.msrb.mxu2 %v430_v15  ;;  %2398 = vmatmul.msk.bf16.vlgmr.msra.gmra.mxu3 %vm257_vm0, %v2957_v25  ;;  %v190_v15 = vpack.c.bf16 %v98_v7, %v97_v6  ;;  %v211_v6 = vpack.c.bf16 %v140_v2, %v139_v1 }
  0x48   :  { %589 = vmatpush.bf16.xpose.msrb.mxu3 %v454_v19  ;;  %v214_v19 = vpack.c.bf16 %v146_v14, %v145_v13 }
  0x49   :  { %v370_v20 = vsel %vm257_vm0, %v190_v15, 0  ;;  %v433_v10 = vsel %vm257_vm0, %v211_v6, 0 }
  0x4a   :  { %v442_v28 = vsel %vm257_vm0, %v214_v19, 0 }
  0x4d   :  { %533 = vmatpush.bf16.xpose.msrb.mxu0 %v379_v32  ;;  %v143_v32 = vld [vmem:[%s4176_s0 + $0x3a0] sm:$0xff] }
  0x4e   :  { %552 = vmatpush.bf16.xpose.msrb.mxu1 %v403_v33  ;;  %v144_v33 = vld [vmem:[%s4176_s0 + $0x3a8] sm:$0xff] }
  0x4f   :  { %571 = vmatpush.bf16.xpose.msrb.mxu2 %v427_v34  ;;  %v189_v34 = vpack.c.bf16 %v96_v24, %v95_v21  ;;  %v213_v37 = vpack.c.bf16 %v144_v33, %v143_v32 }
  0x50   :  { %590 = vmatpush.bf16.xpose.msrb.mxu3 %v451_v38 }
  0x51   :  { %v367_v38 = vsel %vm257_vm0, %v189_v34, 0  ;;  %v439_v44 = vsel %vm257_vm0, %v213_v37, 0 }
  0x54   :  { %2393 = vmatmul.msk.bf16.gmra.mxu0 %vm257_vm0, %v3038_v62 }
  0x55   :  { %534 = vmatpush.bf16.xpose.msrb.mxu0 %v376_v50  ;;  %2395 = vmatmul.msk.bf16.gmra.mxu1 %vm257_vm0, %v3038_v62  ;;  %v188_v50 = vpack.c.bf16 %v94_v42, %v93_v41 }
  0x56   :  { %553 = vmatpush.bf16.xpose.msrb.mxu1 %v400_v51  ;;  %2397 = vmatmul.msk.bf16.gmra.mxu2 %vm257_vm0, %v3038_v62  ;;  %v196_v51 = vpack.c.bf16 %v110_v45, %v109_v43 }
  0x57   :  { %572 = vmatpush.bf16.xpose.msrb.mxu2 %v424_v52  ;;  %2399 = vmatmul.msk.bf16.gmra.mxu3 %vm257_vm0, %v3038_v62  ;;  %v204_v52 = vpack.c.bf16 %v126_v47, %v125_v46  ;;  %v364_v54 = vsel %vm257_vm0, %v188_v50, 0 }
  0x58   :  { %591 = vmatpush.bf16.xpose.msrb.mxu3 %v448_v56  ;;  %v388_v55 = vsel %vm257_vm0, %v196_v51, 0 }
  0x59   :  { %v412_v56 = vsel %vm257_vm0, %v204_v52, 0 }
  0x5d   :  { %535 = vmatpush.bf16.xpose.msrb.mxu0 %v373_v3  ;;  %v187_v3 = vpack.c.bf16 %v92_v58, %v91_v57 }
  0x5e   :  { %554 = vmatpush.bf16.xpose.msrb.mxu1 %v397_v4  ;;  %v195_v4 = vpack.c.bf16 %v108_v61, %v107_v59 }
  0x5f   :  { %573 = vmatpush.bf16.xpose.msrb.mxu2 %v421_v5  ;;  %v203_v5 = vpack.c.bf16 %v124_v0, %v123_v63  ;;  %v361_v7 = vsel %vm257_vm0, %v187_v3, 0 }
  0x60   :  { %592 = vmatpush.bf16.xpose.msrb.mxu3 %v445_v9  ;;  %v385_v8 = vsel %vm257_vm0, %v195_v4, 0 }
  0x61   :  { %v409_v9 = vsel %vm257_vm0, %v203_v5, 0 }
  0x65   :  { %536 = vmatpush.bf16.xpose.msrb.mxu0 %v370_v20 }
  0x66   :  { %555 = vmatpush.bf16.xpose.msrb.mxu1 %v394_v22 }
  0x67   :  { %574 = vmatpush.bf16.xpose.msrb.mxu2 %v418_v23 }
  0x68   :  { %593 = vmatpush.bf16.xpose.msrb.mxu3 %v442_v28 }
  0x6d   :  { %537 = vmatpush.bf16.xpose.msrb.mxu0 %v367_v38 }
  0x6e   :  { %556 = vmatpush.bf16.xpose.msrb.mxu1 %v391_v39 }
  0x6f   :  { %575 = vmatpush.bf16.xpose.msrb.mxu2 %v415_v40 }
  0x70   :  { %594 = vmatpush.bf16.xpose.msrb.mxu3 %v439_v44 }
  0x75   :  { %538 = vmatpush.bf16.xpose.msrb.mxu0 %v364_v54 }
  0x76   :  { %557 = vmatpush.bf16.xpose.msrb.mxu1 %v388_v55 }
  0x77   :  { %576 = vmatpush.bf16.xpose.msrb.mxu2 %v412_v56 }
  0x78   :  { %595 = vmatpush.bf16.xpose.msrb.mxu3 %v436_v60 }
  0x7d   :  { %539 = vmatpush.bf16.xpose.msrb.mxu0 %v361_v7 }
  0x7e   :  { %558 = vmatpush.bf16.xpose.msrb.mxu1 %v385_v8 }
  0x7f   :  { %577 = vmatpush.bf16.xpose.msrb.mxu2 %v409_v9 }
  0x80   :  { %596 = vmatpush.bf16.xpose.msrb.mxu3 %v433_v10 }
  0x84   :  { %2400 = vmatmul.msk.bf16.vlgmr.msrb.gmra.mxu0 %vm257_vm0, %v2957_v25 }
  0x85   :  { %2402 = vmatmul.msk.bf16.vlgmr.msrb.gmra.mxu1 %vm257_vm0, %v2957_v25 }
  0x86   :  { %2404 = vmatmul.msk.bf16.vlgmr.msrb.gmra.mxu2 %vm257_vm0, %v2957_v25 }
  0x87   :  { %2406 = vmatmul.msk.bf16.vlgmr.msrb.gmra.mxu3 %vm257_vm0, %v2957_v25 }
  0x94   :  { %2401 = vmatmul.msk.bf16.gmra.mxu0 %vm257_vm0, %v3038_v62 }
  0x95   :  { %2403 = vmatmul.msk.bf16.gmra.mxu1 %vm257_vm0, %v3038_v62 }
  0x96   :  { %2405 = vmatmul.msk.bf16.gmra.mxu2 %vm257_vm0, %v3038_v62 }
  0x97   :  { %2407 = vmatmul.msk.bf16.gmra.mxu3 %vm257_vm0, %v3038_v62 }
  0xa1   :  { %v3188_v17 = vpop.permute.xlu0 %239 }
  0xa2   :  { %v3186_v13 = vpop.permute.xlu1 %229 }
  0xa9   :  { %v3200_v37 = vpop.permute.xlu0 %244 }
  0xaa   :  { %v3190_v18 = vpop.permute.xlu1 %234 }
  0xc1   :  { %v465_v11 = vpop.f32.mrf.mxu0 }
  0xc2   :  { %v484_v12 = vpop.f32.mrf.mxu1  ;;  %v466_v19 = vadd.f32 %v465_v11, %v3186_v13 }
  0xc3   :  { %v485_v20 = vadd.f32 %v484_v12, %v3186_v13 }
  0xc4   :  { %v608_v26 = vmul.f32 0.5, %v466_v19 }
  0xc5   :  { %v609_v29 = vmul.f32 0.5, %v485_v20 }
  0xc6   :  { %2508 = vtanh.f32 %v608_v26 }
  0xc7   :  { %2510 = vtanh.f32 %v609_v29 }
  0xc9   :  { %v503_v14 = vpop.f32.mrf.mxu2  ;;  %v467_v16 = vpop.f32.mrf.mxu0 }
  0xca   :  { %v522_v15 = vpop.f32.mrf.mxu3  ;;  %v486_v25 = vpop.f32.mrf.mxu1  ;;  %v504_v21 = vadd.f32 %v503_v14, %v3186_v13  ;;  %v468_v62 = vadd.f32 %v467_v16, %v3190_v18 }
  0xcb   :  { %v487_v31 = vadd.f32 %v486_v25, %v3190_v18  ;;  %v523_v34 = vadd.f32 %v522_v15, %v3186_v13 }
  0xcc   :  { %v610_v32 = vmul.f32 0.5, %v504_v21  ;;  %v616_v33 = vmul.f32 0.5, %v468_v62  ;;  %v2509_v49 = vpop.eup %2508 }
  0xcd   :  { %v617_v38 = vmul.f32 0.5, %v487_v31  ;;  %v611_v40 = vmul.f32 0.5, %v523_v34  ;;  %v2511_v52 = vpop.eup %2510  ;;  %v672_v12 = vmul.f32 0.5, %v2509_v49 }
  0xce   :  { %2512 = vtanh.f32 %v610_v32  ;;  %v673_v14 = vmul.f32 0.5, %v2511_v52  ;;  %v3213_v52 = vld [vmem:[%s4179_s3] sm:$0xff] }
  0xcf   :  { %2514 = vtanh.f32 %v616_v33  ;;  %v704_v29 = vadd.f32 0.5, %v672_v12 }
  0xd1   :  { %v505_v22 = vpop.f32.mrf.mxu2  ;;  %v470_v24 = vpop.f32.mrf.mxu0 }
  0xd2   :  { %v524_v23 = vpop.f32.mrf.mxu3  ;;  %v471_v27 = vadd.f32 %v470_v24, %v3188_v17  ;;  %v489_v28 = vpop.f32.mrf.mxu1  ;;  %v506_v44 = vadd.f32 %v505_v22, %v3190_v18 }
  0xd3   :  { %v490_v30 = vadd.f32 %v489_v28, %v3188_v17  ;;  %v525_v48 = vadd.f32 %v524_v23, %v3190_v18 }
  0xd4   :  { %v624_v35 = vmul.f32 0.5, %v471_v27  ;;  %v2513_v55 = vpop.eup %2512  ;;  %v618_v57 = vmul.f32 0.5, %v506_v44 }
  0xd5   :  { %v625_v36 = vmul.f32 0.5, %v490_v30  ;;  %v2515_v58 = vpop.eup %2514  ;;  %v619_v59 = vmul.f32 0.5, %v525_v48  ;;  %v705_v30 = vadd.f32 0.5, %v673_v14  ;;  %v674_v33 = vmul.f32 0.5, %v2513_v55 }
  0xd6   :  { %2516 = vtanh.f32 %v624_v35  ;;  %v680_v19 = vmul.f32 0.5, %v2515_v58 }
  0xd7   :  { %2518 = vtanh.f32 %v625_v36  ;;  %v706_v48 = vadd.f32 0.5, %v674_v33 }
  0xd8   :  { %2520 = vtanh.f32 %v617_v38  ;;  %v712_v32 = vadd.f32 0.5, %v680_v19 }
  0xd9   :  { %v508_v39 = vpop.f32.mrf.mxu2  ;;  %v472_v43 = vpop.f32.mrf.mxu0  ;;  %2522 = vtanh.f32 %v611_v40 }
  0xda   :  { %v509_v41 = vadd.f32 %v508_v39, %v3188_v17  ;;  %v527_v42 = vpop.f32.mrf.mxu3  ;;  %v473_v46 = vadd.f32 %v472_v43, %v3200_v37  ;;  %v491_v47 = vpop.f32.mrf.mxu1 }
  0xdb   :  { %v528_v45 = vadd.f32 %v527_v42, %v3188_v17  ;;  %v492_v51 = vadd.f32 %v491_v47, %v3200_v37  ;;  %v740_v47 = vpack.c.bf16 %v712_v32, %v704_v29 }
  0xdc   :  { %v626_v50 = vmul.f32 0.5, %v509_v41  ;;  %v632_v54 = vmul.f32 0.5, %v473_v46  ;;  %v2517_v60 = vpop.eup %2516 }
  0xdd   :  { %v627_v53 = vmul.f32 0.5, %v528_v45  ;;  %v633_v56 = vmul.f32 0.5, %v492_v51  ;;  %v2519_v61 = vpop.eup %2518  ;;  %v688_v4 = vmul.f32 0.5, %v2517_v60 }
  0xde   :  { %2524 = vtanh.f32 %v626_v50  ;;  %v2521_v0 = vpop.eup %2520  ;;  %v689_v7 = vmul.f32 0.5, %v2519_v61 }
  0xdf   :  { %2526 = vtanh.f32 %v627_v53  ;;  %v2523_v3 = vpop.eup %2522  ;;  %v720_v16 = vadd.f32 0.5, %v688_v4  ;;  %v681_v62 = vmul.f32 0.5, %v2521_v0  ;;  %v757_v0 = vld [vmem:[%s4180_s4 + $0x8] sm:$0xff] }
  0xe0   :  { %2528 = vtanh.f32 %v632_v54  ;;  %v721_v21 = vadd.f32 0.5, %v689_v7  ;;  %v675_v39 = vmul.f32 0.5, %v2523_v3 }
  0xe1   :  { %2530 = vtanh.f32 %v633_v56  ;;  %v510_v63 = vpop.f32.mrf.mxu2  ;;  %v713_v38 = vadd.f32 0.5, %v681_v62 }
  0xe2   :  { %v511_v1 = vadd.f32 %v510_v63, %v3200_v37  ;;  %v529_v2 = vpop.f32.mrf.mxu3  ;;  %2532 = vtanh.f32 %v618_v57  ;;  %v707_v53 = vadd.f32 0.5, %v675_v39  ;;  %v3229_v63 = vld [vmem:[%s4179_s3 + $0x8] sm:$0xff] }
  0xe3   :  { %v530_v5 = vadd.f32 %v529_v2, %v3200_v37  ;;  %2534 = vtanh.f32 %v619_v59  ;;  %v741_v51 = vpack.c.bf16 %v713_v38, %v705_v30  ;;  %v756_v59 = vld [vmem:[%s4180_s4] sm:$0xff] }
  0xe4   :  { %v2525_v6 = vpop.eup %2524  ;;  %v634_v8 = vmul.f32 0.5, %v511_v1  ;;  %762 = vperm.xlu2 %2506, %v756_v59  }
  0xe5   :  { %v2527_v9 = vpop.eup %2526  ;;  %v635_v10 = vmul.f32 0.5, %v530_v5  ;;  %v690_v24 = vmul.f32 0.5, %v2525_v6 }
  0xe6   :  { %v2529_v11 = vpop.eup %2528  ;;  %2536 = vtanh.f32 %v634_v8  ;;  %v691_v27 = vmul.f32 0.5, %v2527_v9 }
  0xe7   :  { %v2531_v15 = vpop.eup %2530  ;;  %v696_v25 = vmul.f32 0.5, %v2529_v11  ;;  %2538 = vtanh.f32 %v635_v10  ;;  %v722_v42 = vadd.f32 0.5, %v690_v24 }
  0xe8   :  { %v2533_v20 = vpop.eup %2532  ;;  %v697_v22 = vmul.f32 0.5, %v2531_v15  ;;  %v723_v44 = vadd.f32 0.5, %v691_v27 }
  0xe9   :  { %v2535_v23 = vpop.eup %2534  ;;  %v728_v26 = vadd.f32 0.5, %v696_v25  ;;  %v682_v34 = vmul.f32 0.5, %v2533_v20 }
  0xea   :  { %v729_v28 = vadd.f32 0.5, %v697_v22  ;;  %v683_v40 = vmul.f32 0.5, %v2535_v23 }
  0xeb   :  { %v748_v31 = vpack.c.bf16 %v728_v26, %v720_v16  ;;  %v714_v49 = vadd.f32 0.5, %v682_v34 }
  0xec   :  { %v2537_v35 = vpop.eup %2536  ;;  %v749_v36 = vpack.c.bf16 %v729_v28, %v721_v21  ;;  %v715_v54 = vadd.f32 0.5, %v683_v40  ;;  %767 = vperm.xlu2 %2506, %v757_v0  }
  0xed   :  { %v2539_v41 = vpop.eup %2538  ;;  %v698_v43 = vmul.f32 0.5, %v2537_v35  ;;  %803 = vmatpush.bf16.msra.mxu0 %v748_v31  ;;  %v742_v57 = vpack.c.bf16 %v714_v49, %v706_v48 }
  0xee   :  { %v699_v45 = vmul.f32 0.5, %v2539_v41  ;;  %822 = vmatpush.bf16.msra.mxu1 %v749_v36  ;;  %v743_v58 = vpack.c.bf16 %v715_v54, %v707_v53 }
  0xef   :  { %v730_v46 = vadd.f32 0.5, %v698_v43 }
  0xf0   :  { %v731_v50 = vadd.f32 0.5, %v699_v45 }
  0xf1   :  { %v750_v55 = vpack.c.bf16 %v730_v46, %v722_v42  ;;  %804 = vmatpush.bf16.msra.mxu0 %v740_v47 }
  0xf2   :  { %v751_v56 = vpack.c.bf16 %v731_v50, %v723_v44  ;;  %823 = vmatpush.bf16.msra.mxu1 %v741_v51 }
  0xf3   :  { %841 = vmatpush.bf16.msra.mxu2 %v750_v55 }
  0xf4   :  { %860 = vmatpush.bf16.msra.mxu3 %v751_v56  ;;  %2416 = vmatmul.msk.bf16.vlgmr.msra.gmra.mxu0 %vm790_vm1, %v3213_v52 }
  0xf5   :  { %2418 = vmatmul.msk.bf16.vlgmr.msra.gmra.mxu1 %vm790_vm1, %v3213_v52 }
  0xf7   :  { %842 = vmatpush.bf16.msra.mxu2 %v742_v57 }
  0xf8   :  { %861 = vmatpush.bf16.msra.mxu3 %v743_v58 }
  0xfa   :  { %2420 = vmatmul.msk.bf16.vlgmr.msra.gmra.mxu2 %vm790_vm1, %v3213_v52 }
  0xfb   :  { %2422 = vmatmul.msk.bf16.vlgmr.msra.gmra.mxu3 %vm790_vm1, %v3213_v52 }
 0x101   :  { %v541_v60 = vpop.f32.mrf.mxu0 }
 0x102   :  { %v560_v61 = vpop.f32.mrf.mxu1  ;;  %v542_v5 = vadd.f32 %v541_v60, %v3186_v13 }
 0x103   :  { %v561_v6 = vadd.f32 %v560_v61, %v3186_v13 }
 0x104   :  { %2417 = vmatmul.msk.bf16.gmra.mxu0 %vm790_vm1, %v3229_v63  ;;  %v612_v14 = vmul.f32 0.5, %v542_v5 }
 0x105   :  { %2419 = vmatmul.msk.bf16.gmra.mxu1 %vm790_vm1, %v3229_v63  ;;  %v613_v16 = vmul.f32 0.5, %v561_v6 }
 0x106   :  { %2540 = vtanh.f32 %v612_v14 }
 0x107   :  { %2542 = vtanh.f32 %v613_v16 }
 0x109   :  { %v579_v1 = vpop.f32.mrf.mxu2  ;;  %v543_v3 = vpop.f32.mrf.mxu0 }
 0x10a   :  { %v598_v2 = vpop.f32.mrf.mxu3  ;;  %v562_v4 = vpop.f32.mrf.mxu1  ;;  %2421 = vmatmul.msk.bf16.gmra.mxu2 %vm790_vm1, %v3229_v63  ;;  %v580_v8 = vadd.f32 %v579_v1, %v3186_v13  ;;  %v544_v20 = vadd.f32 %v543_v3, %v3190_v18 }
 0x10b   :  { %2423 = vmatmul.msk.bf16.gmra.mxu3 %vm790_vm1, %v3229_v63  ;;  %v599_v11 = vadd.f32 %v598_v2, %v3186_v13  ;;  %v563_v22 = vadd.f32 %v562_v4, %v3190_v18 }
 0x10c   :  { %v614_v19 = vmul.f32 0.5, %v580_v8  ;;  %v620_v13 = vmul.f32 0.5, %v544_v20  ;;  %v2541_v38 = vpop.eup %2540 }
 0x10d   :  { %v615_v21 = vmul.f32 0.5, %v599_v11  ;;  %v621_v29 = vmul.f32 0.5, %v563_v22  ;;  %v2543_v41 = vpop.eup %2542  ;;  %v676_v4 = vmul.f32 0.5, %v2541_v38 }
 0x10e   :  { %2544 = vtanh.f32 %v614_v19 }
 0x10f   :  { %2546 = vtanh.f32 %v615_v21  ;;  %v708_v21 = vadd.f32 0.5, %v676_v4 }
 0x111   :  { %v581_v7 = vpop.f32.mrf.mxu2  ;;  %v546_v10 = vpop.f32.mrf.mxu0 }
 0x112   :  { %v600_v9 = vpop.f32.mrf.mxu3  ;;  %v565_v12 = vpop.f32.mrf.mxu1  ;;  %v547_v15 = vadd.f32 %v546_v10, %v3188_v17  ;;  %v582_v33 = vadd.f32 %v581_v7, %v3190_v18  ;;  %v677_v7 = vmul.f32 0.5, %v2543_v41 }
 0x113   :  { %v566_v25 = vadd.f32 %v565_v12, %v3188_v17  ;;  %v601_v35 = vadd.f32 %v600_v9, %v3190_v18 }
 0x114   :  { %v628_v62 = vmul.f32 0.5, %v547_v15  ;;  %v622_v43 = vmul.f32 0.5, %v582_v33 }
 0x115   :  { %v629_v23 = vmul.f32 0.5, %v566_v25  ;;  %v623_v45 = vmul.f32 0.5, %v601_v35 }
 0x116   :  { %2548 = vtanh.f32 %v628_v62 }
 0x117   :  { %2550 = vtanh.f32 %v629_v23  ;;  %v709_v23 = vadd.f32 0.5, %v677_v7 }
 0x118   :  { %2552 = vtanh.f32 %v620_v13 }
 0x119   :  { %v584_v24 = vpop.f32.mrf.mxu2  ;;  %v548_v28 = vpop.f32.mrf.mxu0  ;;  %2554 = vtanh.f32 %v621_v29 }
 0x11a   :  { %v585_v26 = vadd.f32 %v584_v24, %v3188_v17  ;;  %v603_v27 = vpop.f32.mrf.mxu3  ;;  %v549_v31 = vadd.f32 %v548_v28, %v3200_v37  ;;  %v567_v32 = vpop.f32.mrf.mxu1 }
 0x11b   :  { %v604_v30 = vadd.f32 %v603_v27, %v3188_v17  ;;  %v568_v34 = vadd.f32 %v567_v32, %v3200_v37  ;;  %v2545_v17 = vpop.eup %2544 }
 0x11c   :  { %v636_v36 = vmul.f32 0.5, %v549_v31  ;;  %v630_v39 = vmul.f32 0.5, %v585_v26  ;;  %v2547_v44 = vpop.eup %2546  ;;  %v678_v26 = vmul.f32 0.5, %v2545_v17 }
 0x11d   :  { %v637_v40 = vmul.f32 0.5, %v568_v34  ;;  %v631_v42 = vmul.f32 0.5, %v604_v30  ;;  %v2549_v47 = vpop.eup %2548  ;;  %v679_v30 = vmul.f32 0.5, %v2547_v44 }
 0x11e   :  { %2556 = vtanh.f32 %v636_v36  ;;  %v2551_v49 = vpop.eup %2550  ;;  %v692_v55 = vmul.f32 0.5, %v2549_v47 }
 0x11f   :  { %2558 = vtanh.f32 %v637_v40  ;;  %v2553_v51 = vpop.eup %2552  ;;  %v693_v58 = vmul.f32 0.5, %v2551_v49  ;;  %v711_v40 = vadd.f32 0.5, %v679_v30 }
 0x120   :  { %2560 = vtanh.f32 %v630_v39  ;;  %v2555_v54 = vpop.eup %2554  ;;  %v684_v60 = vmul.f32 0.5, %v2553_v51  ;;  %v710_v39 = vadd.f32 0.5, %v678_v26 }
 0x121   :  { %v586_v46 = vpop.f32.mrf.mxu2  ;;  %2562 = vtanh.f32 %v631_v42  ;;  %v685_v1 = vmul.f32 0.5, %v2555_v54  ;;  %v725_v8 = vadd.f32 0.5, %v693_v58 }
 0x122   :  { %v587_v18 = vadd.f32 %v586_v46, %v3200_v37  ;;  %v605_v48 = vpop.f32.mrf.mxu3  ;;  %2564 = vtanh.f32 %v622_v43  ;;  %v716_v11 = vadd.f32 0.5, %v684_v60 }
 0x123   :  { %v606_v50 = vadd.f32 %v605_v48, %v3200_v37  ;;  %2566 = vtanh.f32 %v623_v45  ;;  %v724_v37 = vadd.f32 0.5, %v692_v55  ;;  %v717_v16 = vadd.f32 0.5, %v685_v1 }
 0x124   :  { %v638_v53 = vmul.f32 0.5, %v587_v18  ;;  %v2557_v57 = vpop.eup %2556  ;;  %v744_v29 = vpack.c.bf16 %v716_v11, %v708_v21 }
 0x125   :  { %v639_v56 = vmul.f32 0.5, %v606_v50  ;;  %v2559_v59 = vpop.eup %2558  ;;  %v700_v61 = vmul.f32 0.5, %v2557_v57  ;;  %v745_v33 = vpack.c.bf16 %v717_v16, %v709_v23 }
 0x126   :  { %2568 = vtanh.f32 %v638_v53  ;;  %v2561_v0 = vpop.eup %2560  ;;  %v701_v2 = vmul.f32 0.5, %v2559_v59 }
 0x127   :  { %2570 = vtanh.f32 %v639_v56  ;;  %v2563_v3 = vpop.eup %2562  ;;  %v732_v5 = vadd.f32 0.5, %v700_v61  ;;  %v694_v12 = vmul.f32 0.5, %v2561_v0  ;;  %v3284_v61 = vpop.permute.xlu0 %772 }
 0x128   :  { %v2565_v6 = vpop.eup %2564  ;;  %v733_v9 = vadd.f32 0.5, %v701_v2  ;;  %v695_v25 = vmul.f32 0.5, %v2563_v3 }
 0x129   :  { %v2567_v10 = vpop.eup %2566  ;;  %v752_v14 = vpack.c.bf16 %v732_v5, %v724_v37  ;;  %v686_v22 = vmul.f32 0.5, %v2565_v6  ;;  %v726_v27 = vadd.f32 0.5, %v694_v12 }
 0x12a   :  { %v753_v19 = vpack.c.bf16 %v733_v9, %v725_v8  ;;  %v687_v24 = vmul.f32 0.5, %v2567_v10  ;;  %v727_v31 = vadd.f32 0.5, %v695_v25 }
 0x12b   :  { %879 = vmatpush.bf16.msrb.mxu0 %v752_v14  ;;  %v718_v34 = vadd.f32 0.5, %v686_v22 }
 0x12c   :  { %v2569_v15 = vpop.eup %2568  ;;  %898 = vmatpush.bf16.msrb.mxu1 %v753_v19  ;;  %v719_v36 = vadd.f32 0.5, %v687_v24 }
 0x12d   :  { %v2571_v20 = vpop.eup %2570  ;;  %v702_v62 = vmul.f32 0.5, %v2569_v15  ;;  %v746_v41 = vpack.c.bf16 %v718_v34, %v710_v39 }
 0x12e   :  { %v703_v13 = vmul.f32 0.5, %v2571_v20  ;;  %v747_v42 = vpack.c.bf16 %v719_v36, %v711_v40 }
 0x12f   :  { %v734_v28 = vadd.f32 0.5, %v702_v62  ;;  %880 = vmatpush.bf16.msrb.mxu0 %v744_v29  ;;  %v3290_v62 = vpop.permute.xlu1 %777 }
 0x130   :  { %v735_v32 = vadd.f32 0.5, %v703_v13  ;;  %899 = vmatpush.bf16.msrb.mxu1 %v745_v33 }
 0x131   :  { %v754_v35 = vpack.c.bf16 %v734_v28, %v726_v27 }
 0x132   :  { %v755_v38 = vpack.c.bf16 %v735_v32, %v727_v31  ;;  %2424 = vmatmul.msk.bf16.vlgmr.msrb.gmra.mxu0 %vm790_vm1, %v3213_v52 }
 0x133   :  { %917 = vmatpush.bf16.msrb.mxu2 %v754_v35  ;;  %2426 = vmatmul.msk.bf16.vlgmr.msrb.gmra.mxu1 %vm790_vm1, %v3213_v52 }
 0x134   :  { %936 = vmatpush.bf16.msrb.mxu3 %v755_v38 }
 0x137   :  { %918 = vmatpush.bf16.msrb.mxu2 %v746_v41 }
 0x138   :  { %937 = vmatpush.bf16.msrb.mxu3 %v747_v42 }
 0x13a   :  { %2428 = vmatmul.msk.bf16.vlgmr.msrb.gmra.mxu2 %vm790_vm1, %v3213_v52 }
 0x13b   :  { %2430 = vmatmul.msk.bf16.vlgmr.msrb.gmra.mxu3 %vm790_vm1, %v3213_v52 }
 0x13e   :  { %v3274_v17 = vpop.permute.xlu2 %762 }
 0x142   :  { %2425 = vmatmul.msk.bf16.gmra.mxu0 %vm790_vm1, %v3229_v63 }
 0x143   :  { %2427 = vmatmul.msk.bf16.gmra.mxu1 %vm790_vm1, %v3229_v63 }
 0x146   :  { %v3278_v18 = vpop.permute.xlu2 %767 }
 0x14a   :  { %2429 = vmatmul.msk.bf16.gmra.mxu2 %vm790_vm1, %v3229_v63 }
 0x14b   :  { %2431 = vmatmul.msk.bf16.gmra.mxu3 %vm790_vm1, %v3229_v63 }
 0x171   :  { %v806_v43 = vpop.f32.mrf.mxu0 }
 0x172   :  { %v807_v44 = vadd.f32 %v806_v43, %v3274_v17  ;;  %v825_v45 = vpop.f32.mrf.mxu1 }
 0x173   :  { %v826_v52 = vadd.f32 %v825_v45, %v3274_v17 }
 0x174   :  { %v949_v46 = vmul.f32 0.5, %v807_v44 }
 0x175   :  { %v950_v47 = vmul.f32 0.5, %v826_v52 }
 0x176   :  { %2572 = vtanh.f32 %v949_v46 }
 0x177   :  { %2574 = vtanh.f32 %v950_v47 }
 0x179   :  { %v808_v48 = vpop.f32.mrf.mxu0 }
 0x17a   :  { %v809_v49 = vadd.f32 %v808_v48, %v3278_v18  ;;  %v827_v50 = vpop.f32.mrf.mxu1 }
 0x17b   :  { %v828_v63 = vadd.f32 %v827_v50, %v3278_v18 }
 0x17c   :  { %v957_v51 = vmul.f32 0.5, %v809_v49  ;;  %v2573_v55 = vpop.eup %2572 }
 0x17d   :  { %v958_v53 = vmul.f32 0.5, %v828_v63  ;;  %v844_v54 = vpop.f32.mrf.mxu2  ;;  %v2575_v58 = vpop.eup %2574  ;;  %v1013_v0 = vmul.f32 0.5, %v2573_v55 }
 0x17e   :  { %2576 = vtanh.f32 %v957_v51  ;;  %v845_v56 = vadd.f32 %v844_v54, %v3274_v17  ;;  %v863_v57 = vpop.f32.mrf.mxu3  ;;  %v1014_v3 = vmul.f32 0.5, %v2575_v58 }
 0x17f   :  { %2578 = vtanh.f32 %v958_v53  ;;  %v864_v59 = vadd.f32 %v863_v57, %v3274_v17  ;;  %v1045_v9 = vadd.f32 0.5, %v1013_v0 }
 0x180   :  { %v951_v60 = vmul.f32 0.5, %v845_v56  ;;  %v1046_v14 = vadd.f32 0.5, %v1014_v3 }
 0x181   :  { %v952_v1 = vmul.f32 0.5, %v864_v59  ;;  %v811_v2 = vpop.f32.mrf.mxu0 }
 0x182   :  { %v812_v4 = vadd.f32 %v811_v2, %v3284_v61  ;;  %v830_v37 = vpop.f32.mrf.mxu1  ;;  %2580 = vtanh.f32 %v951_v60 }
 0x183   :  { %v831_v5 = vadd.f32 %v830_v37, %v3284_v61  ;;  %2582 = vtanh.f32 %v952_v1 }
 0x184   :  { %v2577_v6 = vpop.eup %2576  ;;  %v965_v7 = vmul.f32 0.5, %v812_v4 }
 0x185   :  { %v2579_v8 = vpop.eup %2578  ;;  %v1021_v10 = vmul.f32 0.5, %v2577_v6  ;;  %v966_v11 = vmul.f32 0.5, %v831_v5  ;;  %v846_v12 = vpop.f32.mrf.mxu2 }
 0x186   :  { %v1022_v15 = vmul.f32 0.5, %v2579_v8  ;;  %v847_v16 = vadd.f32 %v846_v12, %v3278_v18  ;;  %v865_v25 = vpop.f32.mrf.mxu3  ;;  %2584 = vtanh.f32 %v965_v7 }
 0x187   :  { %v1053_v19 = vadd.f32 0.5, %v1021_v10  ;;  %v866_v20 = vadd.f32 %v865_v25, %v3278_v18  ;;  %2586 = vtanh.f32 %v966_v11 }
 0x188   :  { %v1054_v21 = vadd.f32 0.5, %v1022_v15  ;;  %v959_v22 = vmul.f32 0.5, %v847_v16  ;;  %v2581_v26 = vpop.eup %2580 }
 0x189   :  { %v1077_v23 = vpack.c.bf16 %v1053_v19, %v1045_v9  ;;  %v960_v24 = vmul.f32 0.5, %v866_v20  ;;  %v813_v13 = vpop.f32.mrf.mxu0  ;;  %v2583_v30 = vpop.eup %2582  ;;  %v1015_v33 = vmul.f32 0.5, %v2581_v26 }
 0x18a   :  { %v1078_v27 = vpack.c.bf16 %v1054_v21, %v1046_v14  ;;  %2588 = vtanh.f32 %v959_v22  ;;  %v814_v28 = vadd.f32 %v813_v13, %v3290_v62  ;;  %v832_v29 = vpop.f32.mrf.mxu1  ;;  %v1016_v38 = vmul.f32 0.5, %v2583_v30 }
 0x18b   :  { %2590 = vtanh.f32 %v960_v24  ;;  %v833_v31 = vadd.f32 %v832_v29, %v3290_v62  ;;  %v1047_v45 = vadd.f32 0.5, %v1015_v33 }
 0x18c   :  { %v973_v32 = vmul.f32 0.5, %v814_v28  ;;  %1098 = vxpose.binary.xlu0.c.b16.start [1/4] (short) %v1078_v27, %v1077_v23, 128  ;;  %v2585_v36 = vpop.eup %2584  ;;  %v1048_v46 = vadd.f32 0.5, %v1016_v38 }
 0x18d   :  { %v974_v34 = vmul.f32 0.5, %v833_v31  ;;  %v849_v35 = vpop.f32.mrf.mxu2  ;;  %v2587_v41 = vpop.eup %2586  ;;  %v1029_v49 = vmul.f32 0.5, %v2585_v36 }
 0x18e   :  { %2592 = vtanh.f32 %v973_v32  ;;  %v850_v39 = vadd.f32 %v849_v35, %v3284_v61  ;;  %v868_v40 = vpop.f32.mrf.mxu3  ;;  %v1030_v53 = vmul.f32 0.5, %v2587_v41 }
 0x18f   :  { %2594 = vtanh.f32 %v974_v34  ;;  %v869_v42 = vadd.f32 %v868_v40, %v3284_v61  ;;  %v1061_v2 = vadd.f32 0.5, %v1029_v49 }
 0x190   :  { %v2589_v43 = vpop.eup %2588  ;;  %v967_v48 = vmul.f32 0.5, %v850_v39  ;;  %v1062_v37 = vadd.f32 0.5, %v1030_v53 }
 0x191   :  { %v2591_v44 = vpop.eup %2590  ;;  %v1023_v52 = vmul.f32 0.5, %v2589_v43  ;;  %v968_v63 = vmul.f32 0.5, %v869_v42 }
 0x192   :  { %v1024_v47 = vmul.f32 0.5, %v2591_v44  ;;  %2596 = vtanh.f32 %v967_v48 }
 0x193   :  { %v1055_v50 = vadd.f32 0.5, %v1023_v52  ;;  %2598 = vtanh.f32 %v968_v63 }
 0x194   :  { %v2593_v51 = vpop.eup %2592  ;;  %v1056_v54 = vadd.f32 0.5, %v1024_v47 }
 0x195   :  { %v2595_v55 = vpop.eup %2594  ;;  %v1079_v56 = vpack.c.bf16 %v1055_v50, %v1047_v45  ;;  %v1037_v57 = vmul.f32 0.5, %v2593_v51  ;;  %v851_v58 = vpop.f32.mrf.mxu2 }
 0x196   :  { %v1080_v59 = vpack.c.bf16 %v1056_v54, %v1048_v46  ;;  %v1038_v60 = vmul.f32 0.5, %v2595_v55  ;;  %v852_v0 = vadd.f32 %v851_v58, %v3290_v62  ;;  %v870_v1 = vpop.f32.mrf.mxu3 }
 0x197   :  { %v1069_v3 = vadd.f32 0.5, %v1037_v57  ;;  %v871_v4 = vadd.f32 %v870_v1, %v3290_v62 }
 0x198   :  { %v1070_v5 = vadd.f32 0.5, %v1038_v60  ;;  %v975_v6 = vmul.f32 0.5, %v852_v0  ;;  %1122 = vxpose.binary.xlu1.c.b16.start [1/4] (short) %v1080_v59, %v1079_v56, 128  ;;  %v2597_v10 = vpop.eup %2596 }
 0x199   :  { %v1085_v7 = vpack.c.bf16 %v1069_v3, %v1061_v2  ;;  %v976_v8 = vmul.f32 0.5, %v871_v4  ;;  %v2599_v11 = vpop.eup %2598  ;;  %v1031_v12 = vmul.f32 0.5, %v2597_v10 }
 0x19a   :  { %v1086_v9 = vpack.c.bf16 %v1070_v5, %v1062_v37  ;;  %2600 = vtanh.f32 %v975_v6  ;;  %v1032_v15 = vmul.f32 0.5, %v2599_v11 }
 0x19b   :  { %2602 = vtanh.f32 %v976_v8  ;;  %v1063_v20 = vadd.f32 0.5, %v1031_v12 }
 0x19c   :  { %1099 = vxpose.binary.xlu0.c.b16.end [2/4] (short) %v1086_v9, %v1085_v7, 128  ;;  %v1064_v22 = vadd.f32 0.5, %v1032_v15 }
 0x1a0   :  { %v2601_v14 = vpop.eup %2600 }
 0x1a1   :  { %v2603_v16 = vpop.eup %2602  ;;  %v1039_v25 = vmul.f32 0.5, %v2601_v14 }
 0x1a2   :  { %v1040_v19 = vmul.f32 0.5, %v2603_v16 }
 0x1a3   :  { %v1071_v21 = vadd.f32 0.5, %v1039_v25 }
 0x1a4   :  { %v1072_v23 = vadd.f32 0.5, %v1040_v19 }
 0x1a5   :  { %v1087_v24 = vpack.c.bf16 %v1071_v21, %v1063_v20 }
 0x1a6   :  { %v1088_v13 = vpack.c.bf16 %v1072_v23, %v1064_v22 }
 0x1a8   :  { %1123 = vxpose.binary.xlu1.c.b16.end [2/4] (short) %v1088_v13, %v1087_v24, 128 }
 0x1af   :  { %v882_v26 = vpop.f32.mrf.mxu0 }
 0x1b0   :  { %v883_v27 = vadd.f32 %v882_v26, %v3274_v17  ;;  %v901_v28 = vpop.f32.mrf.mxu1 }
 0x1b1   :  { %v902_v29 = vadd.f32 %v901_v28, %v3274_v17 }
 0x1b2   :  { %v953_v30 = vmul.f32 0.5, %v883_v27 }
 0x1b3   :  { %v954_v31 = vmul.f32 0.5, %v902_v29 }
 0x1b4   :  { %2604 = vtanh.f32 %v953_v30 }
 0x1b5   :  { %2606 = vtanh.f32 %v954_v31 }
 0x1b7   :  { %v884_v32 = vpop.f32.mrf.mxu0 }
 0x1b8   :  { %v885_v33 = vadd.f32 %v884_v32, %v3278_v18  ;;  %v903_v34 = vpop.f32.mrf.mxu1  ;;  %v1093_v32 = vld [vmem:[%s4181_s5] sm:$0xf] }
 0x1b9   :  { %v904_v35 = vadd.f32 %v903_v34, %v3278_v18 }
 0x1ba   :  { %v961_v36 = vmul.f32 0.5, %v885_v33  ;;  %v2605_v39 = vpop.eup %2604 }
 0x1bb   :  { %v962_v38 = vmul.f32 0.5, %v904_v35  ;;  %v2607_v40 = vpop.eup %2606  ;;  %v1017_v44 = vmul.f32 0.5, %v2605_v39 }
 0x1bc   :  { %2608 = vtanh.f32 %v961_v36  ;;  %v1018_v46 = vmul.f32 0.5, %v2607_v40 }
 0x1bd   :  { %2610 = vtanh.f32 %v962_v38  ;;  %v1049_v63 = vadd.f32 0.5, %v1017_v44  ;;  %v920_v25 = vpop.f32.mrf.mxu2 }
 0x1be   :  { %v1050_v54 = vadd.f32 0.5, %v1018_v46  ;;  %v939_v19 = vpop.f32.mrf.mxu3  ;;  %v921_v24 = vadd.f32 %v920_v25, %v3274_v17 }
 0x1bf   :  { %v887_v41 = vpop.f32.mrf.mxu0  ;;  %v940_v13 = vadd.f32 %v939_v19, %v3274_v17 }
 0x1c0   :  { %v888_v42 = vadd.f32 %v887_v41, %v3284_v61  ;;  %v906_v43 = vpop.f32.mrf.mxu1  ;;  %v955_v30 = vmul.f32 0.5, %v921_v24 }
 0x1c1   :  { %v907_v45 = vadd.f32 %v906_v43, %v3284_v61  ;;  %v956_v31 = vmul.f32 0.5, %v940_v13 }
 0x1c2   :  { %v2609_v52 = vpop.eup %2608  ;;  %v969_v50 = vmul.f32 0.5, %v888_v42 }
 0x1c3   :  { %v2611_v47 = vpop.eup %2610  ;;  %v1025_v48 = vmul.f32 0.5, %v2609_v52  ;;  %v970_v53 = vmul.f32 0.5, %v907_v45 }
 0x1c4   :  { %v1026_v49 = vmul.f32 0.5, %v2611_v47  ;;  %2612 = vtanh.f32 %v969_v50 }
 0x1c5   :  { %v1057_v51 = vadd.f32 0.5, %v1025_v48  ;;  %2614 = vtanh.f32 %v970_v53  ;;  %v922_v20 = vpop.f32.mrf.mxu2 }
 0x1c6   :  { %v1058_v55 = vadd.f32 0.5, %v1026_v49  ;;  %v941_v21 = vpop.f32.mrf.mxu3  ;;  %v923_v22 = vadd.f32 %v922_v20, %v3278_v18 }
 0x1c7   :  { %v1081_v56 = vpack.c.bf16 %v1057_v51, %v1049_v63  ;;  %v889_v57 = vpop.f32.mrf.mxu0  ;;  %v942_v23 = vadd.f32 %v941_v21, %v3278_v18  ;;  %v1387_v18 = vsel %vm790_vm1, %v1093_v32, 0 }
 0x1c8   :  { %v1082_v58 = vpack.c.bf16 %v1058_v55, %v1050_v54  ;;  %v890_v59 = vadd.f32 %v889_v57, %v3290_v62  ;;  %v908_v60 = vpop.f32.mrf.mxu1  ;;  %v963_v27 = vmul.f32 0.5, %v923_v22  ;;  %2501 = vmatpush.bf16.xpose.msra.mxu2 %v1387_v18  ;;  %1396 = vmatpush.bf16.xpose.msra.mxu0 %v1387_v18 }
 0x1c9   :  { %v909_v0 = vadd.f32 %v908_v60, %v3290_v62  ;;  %v964_v29 = vmul.f32 0.5, %v942_v23  ;;  %2500 = vmatpush.bf16.xpose.msra.mxu1 %v1387_v18  ;;  %2502 = vmatpush.bf16.xpose.msra.mxu3 %v1387_v18 }
 0x1ca   :  { %v977_v1 = vmul.f32 0.5, %v890_v59  ;;  %1146 = vxpose.binary.xlu2.c.b16.start [1/4] (short) %v1082_v58, %v1081_v56, 128  ;;  %v2613_v3 = vpop.eup %2612 }
 0x1cb   :  { %v978_v2 = vmul.f32 0.5, %v909_v0  ;;  %v2615_v4 = vpop.eup %2614  ;;  %v1033_v37 = vmul.f32 0.5, %v2613_v3 }
 0x1cc   :  { %2616 = vtanh.f32 %v977_v1  ;;  %v1034_v6 = vmul.f32 0.5, %v2615_v4 }
 0x1cd   :  { %2618 = vtanh.f32 %v978_v2  ;;  %v1065_v10 = vadd.f32 0.5, %v1033_v37  ;;  %v925_v26 = vpop.f32.mrf.mxu2 }
 0x1ce   :  { %v1066_v12 = vadd.f32 0.5, %v1034_v6  ;;  %v944_v28 = vpop.f32.mrf.mxu3  ;;  %2620 = vtanh.f32 %v963_v27  ;;  %v926_v43 = vadd.f32 %v925_v26, %v3284_v61 }
 0x1cf   :  { %2622 = vtanh.f32 %v964_v29  ;;  %v945_v44 = vadd.f32 %v944_v28, %v3284_v61 }
 0x1d0   :  { %2624 = vtanh.f32 %v955_v30  ;;  %v971_v50 = vmul.f32 0.5, %v926_v43 }
 0x1d1   :  { %2626 = vtanh.f32 %v956_v31  ;;  %v972_v63 = vmul.f32 0.5, %v945_v44 }
 0x1d2   :  { %v2617_v5 = vpop.eup %2616 }
 0x1d3   :  { %v2619_v7 = vpop.eup %2618  ;;  %v1041_v8 = vmul.f32 0.5, %v2617_v5 }
 0x1d4   :  { %v1042_v9 = vmul.f32 0.5, %v2619_v7  ;;  %v2621_v34 = vpop.eup %2620 }
 0x1d5   :  { %v1073_v11 = vadd.f32 0.5, %v1041_v8  ;;  %v927_v33 = vpop.f32.mrf.mxu2  ;;  %v2623_v17 = vpop.eup %2622  ;;  %v1027_v41 = vmul.f32 0.5, %v2621_v34 }
 0x1d6   :  { %v1074_v14 = vadd.f32 0.5, %v1042_v9  ;;  %v946_v35 = vpop.f32.mrf.mxu3  ;;  %v2625_v36 = vpop.eup %2624  ;;  %v928_v38 = vadd.f32 %v927_v33, %v3290_v62  ;;  %v1028_v42 = vmul.f32 0.5, %v2623_v17 }
 0x1d7   :  { %v1089_v15 = vpack.c.bf16 %v1073_v11, %v1065_v10  ;;  %v2627_v39 = vpop.eup %2626  ;;  %v947_v40 = vadd.f32 %v946_v35, %v3290_v62  ;;  %v1019_v45 = vmul.f32 0.5, %v2625_v36  ;;  %v1059_v48 = vadd.f32 0.5, %v1027_v41 }
 0x1d8   :  { %v1090_v16 = vpack.c.bf16 %v1074_v14, %v1066_v12  ;;  %v1020_v52 = vmul.f32 0.5, %v2627_v39  ;;  %v979_v46 = vmul.f32 0.5, %v928_v38  ;;  %v1060_v49 = vadd.f32 0.5, %v1028_v42 }
 0x1d9   :  { %v980_v47 = vmul.f32 0.5, %v947_v40  ;;  %v1051_v51 = vadd.f32 0.5, %v1019_v45 }
 0x1da   :  { %1147 = vxpose.binary.xlu2.c.b16.end [2/4] (short) %v1090_v16, %v1089_v15, 128  ;;  %v1052_v53 = vadd.f32 0.5, %v1020_v52  ;;  %2628 = vtanh.f32 %v979_v46 }
 0x1db   :  { %2630 = vtanh.f32 %v980_v47  ;;  %v1083_v54 = vpack.c.bf16 %v1059_v48, %v1051_v51 }
 0x1dc   :  { %v1084_v62 = vpack.c.bf16 %v1060_v49, %v1052_v53  ;;  %2632 = vtanh.f32 %v971_v50 }
 0x1dd   :  { %2634 = vtanh.f32 %v972_v63 }
 0x1e0   :  { %v2629_v61 = vpop.eup %2628 }
 0x1e1   :  { %v2631_v57 = vpop.eup %2630  ;;  %v1043_v60 = vmul.f32 0.5, %v2629_v61 }
 0x1e2   :  { %v2633_v58 = vpop.eup %2632  ;;  %v1044_v0 = vmul.f32 0.5, %v2631_v57 }
 0x1e3   :  { %v2635_v59 = vpop.eup %2634  ;;  %v1035_v3 = vmul.f32 0.5, %v2633_v58  ;;  %v1075_v37 = vadd.f32 0.5, %v1043_v60  ;;  %v3397_v58 = vld [vmem:[%s4182_s6] ss:$0 sm:$0xff] }
 0x1e4   :  { %v1036_v4 = vmul.f32 0.5, %v2635_v59  ;;  %v1076_v5 = vadd.f32 0.5, %v1044_v0 }
 0x1e5   :  { %v1067_v6 = vadd.f32 0.5, %v1035_v3 }
 0x1e6   :  { %v1068_v7 = vadd.f32 0.5, %v1036_v4 }
 0x1e7   :  { %v1091_v8 = vpack.c.bf16 %v1075_v37, %v1067_v6 }
 0x1e8   :  { %v1092_v9 = vpack.c.bf16 %v1076_v5, %v1068_v7 }
 0x238   :  { %v1106_v56 = vpop.trf.xlu0 }
 0x239   :  { %2432 = vmatmul.msk.bf16.vlgmr.msra.gmra.mxu0 %vm790_vm1, %v1106_v56 }
 0x240   :  { %v3322_v2 = vpop.trf.xlu0 }
 0x244   :  { %v1130_v55 = vpop.trf.xlu1 }
 0x245   :  { %2448 = vmatmul.msk.bf16.vlgmr.msra.gmra.mxu1 %vm790_vm1, %v1130_v55 }
 0x248   :  { %v1108_v11 = vpop.trf.xlu0 }
 0x249   :  { %2433 = vmatmul.msk.bf16.gmra.mxu0 %vm790_vm1, %v1108_v11 }
 0x24a   :  { %1170 = vxpose.binary.xlu2.c.b16.start [1/4] (short) %v1084_v62, %v1083_v54, 128 }
 0x24c   :  { %v3320_v1 = vpop.trf.xlu1 }
 0x250   :  { %v3328_v14 = vpop.trf.xlu0 }
 0x254   :  { %v1132_v10 = vpop.trf.xlu1 }
 0x255   :  { %2449 = vmatmul.msk.bf16.gmra.mxu1 %vm790_vm1, %v1132_v10 }
 0x258   :  { %v1110_v16 = vpop.trf.xlu0 }
 0x259   :  { %2434 = vmatmul.msk.bf16.gmra.mxu0 %vm790_vm1, %v1110_v16 }
 0x25a   :  { %1171 = vxpose.binary.xlu2.c.b16.end [2/4] (short) %v1092_v9, %v1091_v8, 128 }
 0x25c   :  { %v3326_v12 = vpop.trf.xlu1 }
 0x260   :  { %v3335_v20 = vpop.trf.xlu0 }
 0x264   :  { %v1134_v15 = vpop.trf.xlu1 }
 0x265   :  { %2450 = vmatmul.msk.bf16.gmra.mxu1 %vm790_vm1, %v1134_v15 }
 0x268   :  { %v1112_v23 = vpop.trf.xlu0 }
 0x269   :  { %2435 = vmatmul.msk.bf16.gmra.mxu0 %vm790_vm1, %v1112_v23 }
 0x26b   :  { %v1154_v25 = vpop.trf.xlu2 }
 0x26c   :  { %2464 = vmatmul.msk.bf16.vlgmr.msra.gmra.mxu2 %vm790_vm1, %v1154_v25  ;;  %v3333_v19 = vpop.trf.xlu1 }
 0x270   :  { %v3344_v26 = vpop.trf.xlu0 }
 0x273   :  { %v3337_v21 = vpop.trf.xlu2 }
 0x274   :  { %v1136_v22 = vpop.trf.xlu1 }
 0x275   :  { %2451 = vmatmul.msk.bf16.gmra.mxu1 %vm790_vm1, %v1136_v22 }
 0x278   :  { %v1114_v29 = vpop.trf.xlu0 }
 0x279   :  { %2436 = vmatmul.msk.bf16.gmra.mxu0 %vm790_vm1, %v1114_v29 }
 0x27b   :  { %v1156_v24 = vpop.trf.xlu2 }
 0x27c   :  { %2465 = vmatmul.msk.bf16.gmra.mxu2 %vm790_vm1, %v1156_v24  ;;  %v3342_v13 = vpop.trf.xlu1 }
 0x280   :  { %v3353_v32 = vpop.trf.xlu0 }
 0x283   :  { %v3346_v27 = vpop.trf.xlu2 }
 0x284   :  { %v1138_v28 = vpop.trf.xlu1 }
 0x285   :  { %2452 = vmatmul.msk.bf16.gmra.mxu1 %vm790_vm1, %v1138_v28 }
 0x288   :  { %v1116_v34 = vpop.trf.xlu0 }
 0x289   :  { %2437 = vmatmul.msk.bf16.gmra.mxu0 %vm790_vm1, %v1116_v34 }
 0x28b   :  { %v1158_v30 = vpop.trf.xlu2 }
 0x28c   :  { %2466 = vmatmul.msk.bf16.gmra.mxu2 %vm790_vm1, %v1158_v30  ;;  %v3351_v31 = vpop.trf.xlu1 }
 0x290   :  { %v3362_v36 = vpop.trf.xlu0 }
 0x293   :  { %v3355_v33 = vpop.trf.xlu2 }
 0x294   :  { %v1140_v18 = vpop.trf.xlu1 }
 0x295   :  { %2453 = vmatmul.msk.bf16.gmra.mxu1 %vm790_vm1, %v1140_v18 }
 0x298   :  { %v1118_v40 = vpop.trf.xlu0 }
 0x299   :  { %2438 = vmatmul.msk.bf16.gmra.mxu0 %vm790_vm1, %v1118_v40 }
 0x29b   :  { %v1160_v35 = vpop.trf.xlu2 }
 0x29c   :  { %2467 = vmatmul.msk.bf16.gmra.mxu2 %vm790_vm1, %v1160_v35  ;;  %v3360_v17 = vpop.trf.xlu1 }
 0x2a0   :  { %v3371_v43 = vpop.trf.xlu0 }
 0x2a3   :  { %v3364_v38 = vpop.trf.xlu2 }
 0x2a4   :  { %v1142_v39 = vpop.trf.xlu1 }
 0x2a5   :  { %2454 = vmatmul.msk.bf16.gmra.mxu1 %vm790_vm1, %v1142_v39 }
 0x2a8   :  { %v1120_v52 = vpop.trf.xlu0 }
 0x2a9   :  { %2439 = vmatmul.msk.bf16.gmra.mxu0 %vm790_vm1, %v1120_v52 }
 0x2ab   :  { %v1162_v41 = vpop.trf.xlu2 }
 0x2ac   :  { %2468 = vmatmul.msk.bf16.gmra.mxu2 %vm790_vm1, %v1162_v41  ;;  %v3369_v42 = vpop.trf.xlu1 }
 0x2b3   :  { %v3373_v44 = vpop.trf.xlu2 }
 0x2b4   :  { %v1144_v45 = vpop.trf.xlu1 }
 0x2b5   :  { %2455 = vmatmul.msk.bf16.gmra.mxu1 %vm790_vm1, %v1144_v45 }
 0x2b6   :  { %v1398_v48 = vpop.f32.mrf.mxu0 }
 0x2b7   :  { %v1399_v0 = vadd.f32 %v3397_v58, %v1398_v48 }
 0x2b9   :  { %2440 = vmatmul.msk.bf16.gmra.mxu0 %vm790_vm1, %v3322_v2  ;;  %1719 = vst.msk [vmem:[#allocation2] sm:$0xff] %vm1718_vm2, %v1399_v0 }
 0x2bb   :  { %v1164_v46 = vpop.trf.xlu2 }
 0x2bc   :  { %2469 = vmatmul.msk.bf16.gmra.mxu2 %vm790_vm1, %v1164_v46 }
 0x2be   :  { %v1400_v63 = vpop.f32.mrf.mxu0 }
 0x2bf   :  { %v1401_v8 = vadd.f32 %v3397_v58, %v1400_v63 }
 0x2c0   :  { %v2125_v7 = vld [vmem:[#allocation2] sm:$0xff] }
 0x2c1   :  { %2126 = vst [vmem:[%s4183_s7] sm:$0xff] %v2125_v7 }
 0x2c2   :  { %v1478_v49 = vpop.f32.mrf.mxu1  ;;  %1720 = vst.msk [vmem:[#allocation2 + $0x8] sm:$0xff] %vm1718_vm2, %v1401_v8 }
 0x2c3   :  { %v3378_v47 = vpop.trf.xlu2 }
 0x2c5   :  { %2456 = vmatmul.msk.bf16.gmra.mxu1 %vm790_vm1, %v3320_v1  ;;  %v1479_v1 = vadd.f32 %v3397_v58, %v1478_v49 }
 0x2c6   :  { %v1403_v54 = vpop.f32.mrf.mxu0 }
 0x2c7   :  { %1751 = vst.msk [vmem:[#allocation2 + $0x100] sm:$0xff] %vm1718_vm2, %v1479_v1  ;;  %v1404_v25 = vadd.f32 %v3397_v58, %v1403_v54 }
 0x2c9   :  { %2441 = vmatmul.msk.bf16.gmra.mxu0 %vm790_vm1, %v3328_v14  ;;  %1721 = vst.msk [vmem:[#allocation2 + $0x10] sm:$0xff] %vm1718_vm2, %v1404_v25 }
 0x2ca   :  { %v1480_v51 = vpop.f32.mrf.mxu1 }
 0x2cb   :  { %v1166_v50 = vpop.trf.xlu2  ;;  %v1481_v9 = vadd.f32 %v3397_v58, %v1480_v51 }
 0x2cc   :  { %2470 = vmatmul.msk.bf16.gmra.mxu2 %vm790_vm1, %v1166_v50 }
 0x2cd   :  { %1752 = vst.msk [vmem:[#allocation2 + $0x108] sm:$0xff] %vm1718_vm2, %v1481_v9 }
 0x2ce   :  { %v1405_v56 = vpop.f32.mrf.mxu0  ;;  %v2189_v10 = vld [vmem:[#allocation2 + $0x100] sm:$0xff] }
 0x2cf   :  { %2190 = vst [vmem:[%s4183_s7 + $0x100] sm:$0xff] %v2189_v10  ;;  %v1406_v30 = vadd.f32 %v3397_v58, %v1405_v56 }
 0x2d0   :  { %v2129_v29 = vld [vmem:[#allocation2 + $0x10] sm:$0xff] }
 0x2d1   :  { %2130 = vst [vmem:[%s4183_s7 + $0x10] sm:$0xff] %v2129_v29 }
 0x2d2   :  { %v1483_v62 = vpop.f32.mrf.mxu1  ;;  %1722 = vst.msk [vmem:[#allocation2 + $0x18] sm:$0xff] %vm1718_vm2, %v1406_v30 }
 0x2d3   :  { %v3385_v53 = vpop.trf.xlu2 }
 0x2d4   :  { %v2191_v22 = vld [vmem:[#allocation2 + $0x108] sm:$0xff] }
 0x2d5   :  { %2457 = vmatmul.msk.bf16.gmra.mxu1 %vm790_vm1, %v3326_v12  ;;  %2192 = vst [vmem:[%s4183_s7 + $0x108] sm:$0xff] %v2191_v22 }
 0x2d6   :  { %v3399_v59 = vpop.f32.mrf.mxu0 }
 0x2d7   :  { %v1409_v52 = vadd.f32 %v3397_v58, %v3399_v59 }
 0x2d9   :  { %2442 = vmatmul.msk.bf16.gmra.mxu0 %vm790_vm1, %v3335_v20  ;;  %1723 = vst.msk [vmem:[#allocation2 + $0x20] sm:$0xff] %vm1718_vm2, %v1409_v52  ;;  %v2131_v49 = vld [vmem:[#allocation2 + $0x18] sm:$0xff] }
 0x2da   :  { %v1485_v61 = vpop.f32.mrf.mxu1  ;;  %2132 = vst [vmem:[%s4183_s7 + $0x18] sm:$0xff] %v2131_v49 }
 0x2db   :  { %v1168_v55 = vpop.trf.xlu2  ;;  %v1486_v18 = vadd.f32 %v3397_v58, %v1485_v61 }
 0x2dc   :  { %2471 = vmatmul.msk.bf16.gmra.mxu2 %vm790_vm1, %v1168_v55 }
 0x2dd   :  { %1754 = vst.msk [vmem:[#allocation2 + $0x118] sm:$0xff] %vm1718_vm2, %v1486_v18 }
 0x2de   :  { %v3415_v37 = vpop.f32.mrf.mxu0 }
 0x2df   :  { %v1411_v55 = vadd.f32 %v3397_v58, %v3415_v37 }
 0x2e1   :  { %1724 = vst.msk [vmem:[#allocation2 + $0x28] sm:$0xff] %vm1718_vm2, %v1411_v55 }
 0x2e2   :  { %v3401_v60 = vpop.f32.mrf.mxu1 }
 0x2e3   :  { %v3392_v57 = vpop.trf.xlu2  ;;  %v1489_v46 = vadd.f32 %v3397_v58, %v3401_v60 }
 0x2e4   :  { %v2195_v50 = vld [vmem:[#allocation2 + $0x118] sm:$0xff] }
 0x2e5   :  { %2458 = vmatmul.msk.bf16.gmra.mxu1 %vm790_vm1, %v3333_v19  ;;  %v1484_v19 = vadd.f32 %v3397_v58, %v1483_v62  ;;  %1755 = vst.msk [vmem:[#allocation2 + $0x120] sm:$0xff] %vm1718_vm2, %v1489_v46  ;;  %v2133_v62 = vld [vmem:[#allocation2 + $0x20] sm:$0xff] }
 0x2e6   :  { %v3433_v14 = vpop.f32.mrf.mxu0  ;;  %2196 = vst [vmem:[%s4183_s7 + $0x118] sm:$0xff] %v2195_v50 }
 0x2e7   :  { %1753 = vst.msk [vmem:[#allocation2 + $0x110] sm:$0xff] %vm1718_vm2, %v1484_v19 }
 0x2e8   :  { %2134 = vst [vmem:[%s4183_s7 + $0x20] sm:$0xff] %v2133_v62 }
 0x2e9   :  { %2443 = vmatmul.msk.bf16.gmra.mxu0 %vm790_vm1, %v3344_v26 }
 0x2ea   :  { %v3417_v5 = vpop.f32.mrf.mxu1 }
 0x2eb   :  { %v1178_v2 = vpop.trf.xlu2  ;;  %v1491_v56 = vadd.f32 %v3397_v58, %v3417_v5  ;;  %v2135_v5 = vld [vmem:[#allocation2 + $0x28] sm:$0xff] }
 0x2ec   :  { %2472 = vmatmul.msk.bf16.gmra.mxu2 %vm790_vm1, %v3337_v21  ;;  %2480 = vmatmul.msk.bf16.vlgmr.msra.gmra.mxu3 %vm790_vm1, %v1178_v2  ;;  %v2127_v21 = vld [vmem:[#allocation2 + $0x8] sm:$0xff]  ;;  %v2197_v61 = vld [vmem:[#allocation2 + $0x120] sm:$0xff]  ;;  %2136 = vst [vmem:[%s4183_s7 + $0x28] sm:$0xff] %v2135_v5 }
 0x2ed   :  { %2128 = vst [vmem:[%s4183_s7 + $0x8] sm:$0xff] %v2127_v21 }
 0x2ee   :  { %v2193_v34 = vld [vmem:[#allocation2 + $0x110] sm:$0xff]  ;;  %2198 = vst [vmem:[%s4183_s7 + $0x120] sm:$0xff] %v2197_v61 }
 0x2ef   :  { %v1558_v3 = vpop.f32.mrf.mxu2  ;;  %2194 = vst [vmem:[%s4183_s7 + $0x110] sm:$0xff] %v2193_v34 }
 0x2f0   :  { %v1559_v4 = vadd.f32 %v3397_v58, %v1558_v3  ;;  %1756 = vst.msk [vmem:[#allocation2 + $0x128] sm:$0xff] %vm1718_vm2, %v1491_v56  ;;  %v1414_v3 = vadd.f32 %v3397_v58, %v3433_v14 }
 0x2f2   :  { %1783 = vst.msk [vmem:[#allocation2 + $0x200] sm:$0xff] %vm1718_vm2, %v1559_v4  ;;  %v3435_v15 = vpop.f32.mrf.mxu1 }
 0x2f3   :  { %v3420_v6 = vpop.trf.xlu2  ;;  %v1494_v4 = vadd.f32 %v3397_v58, %v3435_v15  ;;  %1725 = vst.msk [vmem:[#allocation2 + $0x30] sm:$0xff] %vm1718_vm2, %v1414_v3 }
 0x2f5   :  { %2459 = vmatmul.msk.bf16.gmra.mxu1 %vm790_vm1, %v3342_v13  ;;  %v3459_v13 = vpop.f32.mrf.mxu0  ;;  %1757 = vst.msk [vmem:[#allocation2 + $0x130] sm:$0xff] %vm1718_vm2, %v1494_v4 }
 0x2f7   :  { %v1560_v11 = vpop.f32.mrf.mxu2  ;;  %v2199_v7 = vld [vmem:[#allocation2 + $0x128] sm:$0xff] }
 0x2f8   :  { %v1561_v12 = vadd.f32 %v3397_v58, %v1560_v11  ;;  %2200 = vst [vmem:[%s4183_s7 + $0x128] sm:$0xff] %v2199_v7 }
 0x2f9   :  { %v2253_v16 = vld [vmem:[#allocation2 + $0x200] sm:$0xff]  ;;  %2444 = vmatmul.msk.bf16.gmra.mxu0 %vm790_vm1, %v3353_v32 }
 0x2fa   :  { %2254 = vst [vmem:[%s4183_s7 + $0x200] sm:$0xff] %v2253_v16  ;;  %v3461_v26 = vpop.f32.mrf.mxu1  ;;  %v2137_v11 = vld [vmem:[#allocation2 + $0x30] sm:$0xff] }
 0x2fb   :  { %1784 = vst.msk [vmem:[#allocation2 + $0x208] sm:$0xff] %vm1718_vm2, %v1561_v12  ;;  %v1180_v20 = vpop.trf.xlu2  ;;  %v1416_v12 = vadd.f32 %v3397_v58, %v3459_v13  ;;  %v1496_v14 = vadd.f32 %v3397_v58, %v3461_v26 }
 0x2fc   :  { %2473 = vmatmul.msk.bf16.gmra.mxu2 %vm790_vm1, %v3346_v27  ;;  %2481 = vmatmul.msk.bf16.gmra.mxu3 %vm790_vm1, %v1180_v20  ;;  %2138 = vst [vmem:[%s4183_s7 + $0x30] sm:$0xff] %v2137_v11  ;;  %v2201_v15 = vld [vmem:[#allocation2 + $0x130] sm:$0xff] }
 0x2fd   :  { %v3480_v40 = vpop.f32.mrf.mxu0  ;;  %2202 = vst [vmem:[%s4183_s7 + $0x130] sm:$0xff] %v2201_v15 }
 0x2fe   :  { %1726 = vst.msk [vmem:[#allocation2 + $0x38] sm:$0xff] %vm1718_vm2, %v1416_v12  ;;  %v1419_v22 = vadd.f32 %v3397_v58, %v3480_v40 }
 0x2ff   :  { %v1563_v23 = vpop.f32.mrf.mxu2  ;;  %1758 = vst.msk [vmem:[#allocation2 + $0x138] sm:$0xff] %vm1718_vm2, %v1496_v14 }
 0x300   :  { %v1564_v24 = vadd.f32 %v3397_v58, %v1563_v23  ;;  %1727 = vst.msk [vmem:[#allocation2 + $0x40] sm:$0xff] %vm1718_vm2, %v1419_v22 }
 0x302   :  { %v2255_v27 = vld [vmem:[#allocation2 + $0x208] sm:$0xff]  ;;  %1785 = vst.msk [vmem:[#allocation2 + $0x210] sm:$0xff] %vm1718_vm2, %v1564_v24  ;;  %v3482_v41 = vpop.f32.mrf.mxu1 }
 0x303   :  { %2256 = vst [vmem:[%s4183_s7 + $0x208] sm:$0xff] %v2255_v27  ;;  %v3467_v28 = vpop.trf.xlu2  ;;  %v1499_v23 = vadd.f32 %v3397_v58, %v3482_v41 }
 0x305   :  { %2460 = vmatmul.msk.bf16.gmra.mxu1 %vm790_vm1, %v3351_v31  ;;  %v3508_v32 = vpop.f32.mrf.mxu0  ;;  %v2139_v13 = vld [vmem:[#allocation2 + $0x38] sm:$0xff]  ;;  %1759 = vst.msk [vmem:[#allocation2 + $0x140] sm:$0xff] %vm1718_vm2, %v1499_v23 }
 0x306   :  { %2140 = vst [vmem:[%s4183_s7 + $0x38] sm:$0xff] %v2139_v13  ;;  %v2203_v26 = vld [vmem:[#allocation2 + $0x138] sm:$0xff]  ;;  %v1421_v34 = vadd.f32 %v3397_v58, %v3508_v32 }
 0x307   :  { %v1565_v35 = vpop.f32.mrf.mxu2  ;;  %2204 = vst [vmem:[%s4183_s7 + $0x138] sm:$0xff] %v2203_v26  ;;  %v2141_v18 = vld [vmem:[#allocation2 + $0x40] sm:$0xff] }
 0x308   :  { %v1566_v39 = vadd.f32 %v3397_v58, %v1565_v35  ;;  %2142 = vst [vmem:[%s4183_s7 + $0x40] sm:$0xff] %v2141_v18 }
 0x309   :  { %v2257_v45 = vld [vmem:[#allocation2 + $0x210] sm:$0xff]  ;;  %2445 = vmatmul.msk.bf16.gmra.mxu0 %vm790_vm1, %v3362_v36  ;;  %1728 = vst.msk [vmem:[#allocation2 + $0x48] sm:$0xff] %vm1718_vm2, %v1421_v34 }
 0x30a   :  { %2258 = vst [vmem:[%s4183_s7 + $0x210] sm:$0xff] %v2257_v45 }
 0x30b   :  { %1786 = vst.msk [vmem:[#allocation2 + $0x218] sm:$0xff] %vm1718_vm2, %v1566_v39  ;;  %v1182_v48 = vpop.trf.xlu2 }
 0x30c   :  { %2474 = vmatmul.msk.bf16.gmra.mxu2 %vm790_vm1, %v3355_v33  ;;  %2482 = vmatmul.msk.bf16.gmra.mxu3 %vm790_vm1, %v1182_v48  ;;  %v3510_v33 = vpop.f32.mrf.mxu1  ;;  %v2205_v39 = vld [vmem:[#allocation2 + $0x140] sm:$0xff] }
 0x30d   :  { %v3531_v0 = vpop.f32.mrf.mxu0  ;;  %v1501_v35 = vadd.f32 %v3397_v58, %v3510_v33  ;;  %2206 = vst [vmem:[%s4183_s7 + $0x140] sm:$0xff] %v2205_v39 }
 0x30e   :  { %v1424_v48 = vadd.f32 %v3397_v58, %v3531_v0 }
 0x30f   :  { %v1568_v63 = vpop.f32.mrf.mxu2  ;;  %1760 = vst.msk [vmem:[#allocation2 + $0x148] sm:$0xff] %vm1718_vm2, %v1501_v35 }
 0x310   :  { %v1569_v31 = vadd.f32 %v3397_v58, %v1568_v63  ;;  %1729 = vst.msk [vmem:[#allocation2 + $0x50] sm:$0xff] %vm1718_vm2, %v1424_v48  ;;  %v2143_v63 = vld [vmem:[#allocation2 + $0x48] sm:$0xff] }
 0x311   :  { %2144 = vst [vmem:[%s4183_s7 + $0x48] sm:$0xff] %v2143_v63 }
 0x312   :  { %v2259_v51 = vld [vmem:[#allocation2 + $0x218] sm:$0xff]  ;;  %1787 = vst.msk [vmem:[#allocation2 + $0x220] sm:$0xff] %vm1718_vm2, %v1569_v31 }
 0x313   :  { %2260 = vst [vmem:[%s4183_s7 + $0x218] sm:$0xff] %v2259_v51  ;;  %v3516_v54 = vpop.trf.xlu2 }
 0x314   :  { %v3533_v1 = vpop.f32.mrf.mxu1 }
 0x315   :  { %2461 = vmatmul.msk.bf16.gmra.mxu1 %vm790_vm1, %v3360_v17  ;;  %v3559_v36 = vpop.f32.mrf.mxu0  ;;  %v1504_v49 = vadd.f32 %v3397_v58, %v3533_v1 }
 0x316   :  { %v2207_v31 = vld [vmem:[#allocation2 + $0x148] sm:$0xff]  ;;  %v1426_v61 = vadd.f32 %v3397_v58, %v3559_v36 }
 0x317   :  { %v1570_v59 = vpop.f32.mrf.mxu2  ;;  %1761 = vst.msk [vmem:[#allocation2 + $0x150] sm:$0xff] %vm1718_vm2, %v1504_v49  ;;  %v2145_v56 = vld [vmem:[#allocation2 + $0x50] sm:$0xff] }
 0x318   :  { %v1571_v60 = vadd.f32 %v3397_v58, %v1570_v59  ;;  %2208 = vst [vmem:[%s4183_s7 + $0x148] sm:$0xff] %v2207_v31 }
 0x319   :  { %v2261_v2 = vld [vmem:[#allocation2 + $0x220] sm:$0xff]  ;;  %2446 = vmatmul.msk.bf16.gmra.mxu0 %vm790_vm1, %v3371_v43  ;;  %2146 = vst [vmem:[%s4183_s7 + $0x50] sm:$0xff] %v2145_v56 }
 0x31a   :  { %2262 = vst [vmem:[%s4183_s7 + $0x220] sm:$0xff] %v2261_v2 }
 0x31b   :  { %1788 = vst.msk [vmem:[#allocation2 + $0x228] sm:$0xff] %vm1718_vm2, %v1571_v60  ;;  %v1184_v37 = vpop.trf.xlu2 }
 0x31c   :  { %2475 = vmatmul.msk.bf16.gmra.mxu2 %vm790_vm1, %v3364_v38  ;;  %2483 = vmatmul.msk.bf16.gmra.mxu3 %vm790_vm1, %v1184_v37  ;;  %v3561_v38 = vpop.f32.mrf.mxu1  ;;  %1730 = vst.msk [vmem:[#allocation2 + $0x58] sm:$0xff] %vm1718_vm2, %v1426_v61 }
 0x31d   :  { %v3582_v19 = vpop.f32.mrf.mxu0  ;;  %v1506_v59 = vadd.f32 %v3397_v58, %v3561_v38 }
 0x31e   :  { %v2209_v60 = vld [vmem:[#allocation2 + $0x150] sm:$0xff]  ;;  %v1429_v3 = vadd.f32 %v3397_v58, %v3582_v19 }
 0x31f   :  { %v1573_v8 = vpop.f32.mrf.mxu2  ;;  %2210 = vst [vmem:[%s4183_s7 + $0x150] sm:$0xff] %v2209_v60 }
 0x320   :  { %v1574_v17 = vadd.f32 %v3397_v58, %v1573_v8  ;;  %1762 = vst.msk [vmem:[#allocation2 + $0x158] sm:$0xff] %vm1718_vm2, %v1506_v59 }
 0x321   :  { %1731 = vst.msk [vmem:[#allocation2 + $0x60] sm:$0xff] %vm1718_vm2, %v1429_v3 }
 0x322   :  { %v2263_v9 = vld [vmem:[#allocation2 + $0x228] sm:$0xff]  ;;  %1789 = vst.msk [vmem:[#allocation2 + $0x230] sm:$0xff] %vm1718_vm2, %v1574_v17 }
 0x323   :  { %2264 = vst [vmem:[%s4183_s7 + $0x228] sm:$0xff] %v2263_v9  ;;  %v3567_v10 = vpop.trf.xlu2  ;;  %v2147_v8 = vld [vmem:[#allocation2 + $0x58] sm:$0xff] }
 0x324   :  { %v3584_v20 = vpop.f32.mrf.mxu1  ;;  %2148 = vst [vmem:[%s4183_s7 + $0x58] sm:$0xff] %v2147_v8 }
 0x325   :  { %2462 = vmatmul.msk.bf16.gmra.mxu1 %vm790_vm1, %v3369_v42  ;;  %v3610_v43 = vpop.f32.mrf.mxu0  ;;  %v1509_v4 = vadd.f32 %v3397_v58, %v3584_v20 }
 0x326   :  { %v1431_v15 = vadd.f32 %v3397_v58, %v3610_v43 }
 0x327   :  { %v1575_v16 = vpop.f32.mrf.mxu2  ;;  %1763 = vst.msk [vmem:[#allocation2 + $0x160] sm:$0xff] %vm1718_vm2, %v1509_v4  ;;  %v2211_v17 = vld [vmem:[#allocation2 + $0x158] sm:$0xff] }
 0x328   :  { %v1576_v25 = vadd.f32 %v3397_v58, %v1575_v16  ;;  %2212 = vst [vmem:[%s4183_s7 + $0x158] sm:$0xff] %v2211_v17  ;;  %v2149_v14 = vld [vmem:[#allocation2 + $0x60] sm:$0xff] }
 0x329   :  { %v2265_v21 = vld [vmem:[#allocation2 + $0x230] sm:$0xff]  ;;  %2150 = vst [vmem:[%s4183_s7 + $0x60] sm:$0xff] %v2149_v14 }
 0x32a   :  { %2266 = vst [vmem:[%s4183_s7 + $0x230] sm:$0xff] %v2265_v21 }
 0x32b   :  { %1790 = vst.msk [vmem:[#allocation2 + $0x238] sm:$0xff] %vm1718_vm2, %v1576_v25  ;;  %v1186_v24 = vpop.trf.xlu2 }
 0x32c   :  { %2476 = vmatmul.msk.bf16.gmra.mxu2 %vm790_vm1, %v3373_v44  ;;  %2484 = vmatmul.msk.bf16.gmra.mxu3 %vm790_vm1, %v1186_v24  ;;  %v3612_v44 = vpop.f32.mrf.mxu1  ;;  %1732 = vst.msk [vmem:[#allocation2 + $0x68] sm:$0xff] %vm1718_vm2, %v1431_v15 }
 0x32d   :  { %v3633_v52 = vpop.f32.mrf.mxu0  ;;  %v1511_v16 = vadd.f32 %v3397_v58, %v3612_v44 }
 0x32e   :  { %v2213_v25 = vld [vmem:[#allocation2 + $0x160] sm:$0xff]  ;;  %v1434_v43 = vadd.f32 %v3397_v58, %v3633_v52 }
 0x32f   :  { %v1578_v27 = vpop.f32.mrf.mxu2  ;;  %2214 = vst [vmem:[%s4183_s7 + $0x160] sm:$0xff] %v2213_v25 }
 0x330   :  { %v1579_v42 = vadd.f32 %v3397_v58, %v1578_v27  ;;  %1764 = vst.msk [vmem:[#allocation2 + $0x168] sm:$0xff] %vm1718_vm2, %v1511_v16 }
 0x331   :  { %1733 = vst.msk [vmem:[#allocation2 + $0x70] sm:$0xff] %vm1718_vm2, %v1434_v43 }
 0x332   :  { %v2267_v29 = vld [vmem:[#allocation2 + $0x238] sm:$0xff]  ;;  %1791 = vst.msk [vmem:[#allocation2 + $0x240] sm:$0xff] %vm1718_vm2, %v1579_v42 }
 0x333   :  { %2268 = vst [vmem:[%s4183_s7 + $0x238] sm:$0xff] %v2267_v29  ;;  %v3618_v30 = vpop.trf.xlu2  ;;  %v2151_v44 = vld [vmem:[#allocation2 + $0x68] sm:$0xff] }
 0x334   :  { %v3635_v46 = vpop.f32.mrf.mxu1  ;;  %2152 = vst [vmem:[%s4183_s7 + $0x68] sm:$0xff] %v2151_v44 }
 0x335   :  { %v3658_v51 = vpop.f32.mrf.mxu0  ;;  %v1514_v29 = vadd.f32 %v3397_v58, %v3635_v46 }
 0x336   :  { %v1436_v46 = vadd.f32 %v3397_v58, %v3658_v51 }
 0x337   :  { %v1580_v40 = vpop.f32.mrf.mxu2  ;;  %v2215_v18 = vld [vmem:[#allocation2 + $0x168] sm:$0xff]  ;;  %1765 = vst.msk [vmem:[#allocation2 + $0x170] sm:$0xff] %vm1718_vm2, %v1514_v29 }
 0x338   :  { %v1581_v41 = vadd.f32 %v3397_v58, %v1580_v40  ;;  %2216 = vst [vmem:[%s4183_s7 + $0x168] sm:$0xff] %v2215_v18  ;;  %v2153_v49 = vld [vmem:[#allocation2 + $0x70] sm:$0xff] }
 0x339   :  { %v2269_v45 = vld [vmem:[#allocation2 + $0x240] sm:$0xff]  ;;  %1734 = vst.msk [vmem:[#allocation2 + $0x78] sm:$0xff] %vm1718_vm2, %v1436_v46 }
 0x33a   :  { %2270 = vst [vmem:[%s4183_s7 + $0x240] sm:$0xff] %v2269_v45 }
 0x33b   :  { %1792 = vst.msk [vmem:[#allocation2 + $0x248] sm:$0xff] %vm1718_vm2, %v1581_v41  ;;  %v1188_v50 = vpop.trf.xlu2 }
 0x33c   :  { %2477 = vmatmul.msk.bf16.gmra.mxu2 %vm790_vm1, %v3378_v47  ;;  %2485 = vmatmul.msk.bf16.gmra.mxu3 %vm790_vm1, %v1188_v50  ;;  %v3660_v62 = vpop.f32.mrf.mxu1  ;;  %2154 = vst [vmem:[%s4183_s7 + $0x70] sm:$0xff] %v2153_v49 }
 0x33d   :  { %v1438_v37 = vpop.f32.mrf.mxu0  ;;  %v1516_v31 = vadd.f32 %v3397_v58, %v3660_v62 }
 0x33e   :  { %v1439_v19 = vadd.f32 %v3397_v58, %v1438_v37  ;;  %v2217_v63 = vld [vmem:[#allocation2 + $0x170] sm:$0xff] }
 0x33f   :  { %v1583_v32 = vpop.f32.mrf.mxu2  ;;  %2218 = vst [vmem:[%s4183_s7 + $0x170] sm:$0xff] %v2217_v63 }
 0x340   :  { %v1584_v33 = vadd.f32 %v3397_v58, %v1583_v32  ;;  %1735 = vst.msk [vmem:[#allocation2 + $0x80] sm:$0xff] %vm1718_vm2, %v1439_v19  ;;  %v2155_v59 = vld [vmem:[#allocation2 + $0x78] sm:$0xff] }
 0x341   :  { %1766 = vst.msk [vmem:[#allocation2 + $0x178] sm:$0xff] %vm1718_vm2, %v1516_v31 }
 0x342   :  { %v2271_v47 = vld [vmem:[#allocation2 + $0x248] sm:$0xff]  ;;  %1793 = vst.msk [vmem:[#allocation2 + $0x250] sm:$0xff] %vm1718_vm2, %v1584_v33 }
 0x343   :  { %2272 = vst [vmem:[%s4183_s7 + $0x248] sm:$0xff] %v2271_v47  ;;  %v3665_v55 = vpop.trf.xlu2 }
 0x344   :  { %v1518_v5 = vpop.f32.mrf.mxu1  ;;  %2156 = vst [vmem:[%s4183_s7 + $0x78] sm:$0xff] %v2155_v59 }
 0x345   :  { %v1440_v9 = vpop.f32.mrf.mxu0  ;;  %v1519_v20 = vadd.f32 %v3397_v58, %v1518_v5 }
 0x346   :  { %v1441_v23 = vadd.f32 %v3397_v58, %v1440_v9 }
 0x347   :  { %v1585_v0 = vpop.f32.mrf.mxu2  ;;  %1767 = vst.msk [vmem:[#allocation2 + $0x180] sm:$0xff] %vm1718_vm2, %v1519_v20  ;;  %v2157_v35 = vld [vmem:[#allocation2 + $0x80] sm:$0xff] }
 0x348   :  { %v1586_v1 = vadd.f32 %v3397_v58, %v1585_v0  ;;  %1736 = vst.msk [vmem:[#allocation2 + $0x88] sm:$0xff] %vm1718_vm2, %v1441_v23  ;;  %v2219_v37 = vld [vmem:[#allocation2 + $0x178] sm:$0xff] }
 0x349   :  { %v2273_v2 = vld [vmem:[#allocation2 + $0x250] sm:$0xff]  ;;  %2158 = vst [vmem:[%s4183_s7 + $0x80] sm:$0xff] %v2157_v35 }
 0x34a   :  { %2274 = vst [vmem:[%s4183_s7 + $0x250] sm:$0xff] %v2273_v2 }
 0x34b   :  { %1794 = vst.msk [vmem:[#allocation2 + $0x258] sm:$0xff] %vm1718_vm2, %v1586_v1  ;;  %v1190_v7 = vpop.trf.xlu2 }
 0x34c   :  { %2478 = vmatmul.msk.bf16.gmra.mxu2 %vm790_vm1, %v3385_v53  ;;  %2486 = vmatmul.msk.bf16.gmra.mxu3 %vm790_vm1, %v1190_v7  ;;  %v1520_v11 = vpop.f32.mrf.mxu1  ;;  %2220 = vst [vmem:[%s4183_s7 + $0x178] sm:$0xff] %v2219_v37 }
 0x34d   :  { %v1521_v13 = vadd.f32 %v3397_v58, %v1520_v11  ;;  %v1443_v26 = vpop.f32.mrf.mxu0 }
 0x34e   :  { %v2221_v40 = vld [vmem:[#allocation2 + $0x180] sm:$0xff]  ;;  %v1444_v47 = vadd.f32 %v3397_v58, %v1443_v26 }
 0x34f   :  { %v1588_v36 = vpop.f32.mrf.mxu2  ;;  %1768 = vst.msk [vmem:[#allocation2 + $0x188] sm:$0xff] %vm1718_vm2, %v1521_v13  ;;  %v2159_v52 = vld [vmem:[#allocation2 + $0x88] sm:$0xff] }
 0x350   :  { %v1589_v38 = vadd.f32 %v3397_v58, %v1588_v36  ;;  %2222 = vst [vmem:[%s4183_s7 + $0x180] sm:$0xff] %v2221_v40 }
 0x351   :  { %2160 = vst [vmem:[%s4183_s7 + $0x88] sm:$0xff] %v2159_v52 }
 0x352   :  { %v2275_v53 = vld [vmem:[#allocation2 + $0x258] sm:$0xff]  ;;  %1795 = vst.msk [vmem:[#allocation2 + $0x260] sm:$0xff] %vm1718_vm2, %v1589_v38 }
 0x353   :  { %2276 = vst [vmem:[%s4183_s7 + $0x258] sm:$0xff] %v2275_v53  ;;  %v3704_v12 = vpop.trf.xlu2 }
 0x354   :  { %v1523_v27 = vpop.f32.mrf.mxu1  ;;  %1737 = vst.msk [vmem:[#allocation2 + $0x90] sm:$0xff] %vm1718_vm2, %v1444_v47 }
 0x355   :  { %v1445_v41 = vpop.f32.mrf.mxu0  ;;  %v1524_v62 = vadd.f32 %v3397_v58, %v1523_v27 }
 0x356   :  { %v2223_v33 = vld [vmem:[#allocation2 + $0x188] sm:$0xff]  ;;  %v1446_v61 = vadd.f32 %v3397_v58, %v1445_v41 }
 0x357   :  { %v1590_v21 = vpop.f32.mrf.mxu2  ;;  %2224 = vst [vmem:[%s4183_s7 + $0x188] sm:$0xff] %v2223_v33 }
 0x358   :  { %v1591_v22 = vadd.f32 %v3397_v58, %v1590_v21  ;;  %1769 = vst.msk [vmem:[#allocation2 + $0x190] sm:$0xff] %vm1718_vm2, %v1524_v62 }
 0x359   :  { %v2277_v24 = vld [vmem:[#allocation2 + $0x260] sm:$0xff]  ;;  %1738 = vst.msk [vmem:[#allocation2 + $0x98] sm:$0xff] %vm1718_vm2, %v1446_v61 }
 0x35a   :  { %2278 = vst [vmem:[%s4183_s7 + $0x260] sm:$0xff] %v2277_v24 }
 0x35b   :  { %1796 = vst.msk [vmem:[#allocation2 + $0x268] sm:$0xff] %vm1718_vm2, %v1591_v22  ;;  %v1192_v42 = vpop.trf.xlu2  ;;  %v2161_v7 = vld [vmem:[#allocation2 + $0x90] sm:$0xff] }
 0x35c   :  { %2479 = vmatmul.msk.bf16.gmra.mxu2 %vm790_vm1, %v3392_v57  ;;  %2487 = vmatmul.msk.bf16.gmra.mxu3 %vm790_vm1, %v1192_v42  ;;  %v1525_v45 = vpop.f32.mrf.mxu1  ;;  %2162 = vst [vmem:[%s4183_s7 + $0x90] sm:$0xff] %v2161_v7 }
 0x35d   :  { %v1448_v51 = vpop.f32.mrf.mxu0  ;;  %v1526_v5 = vadd.f32 %v3397_v58, %v1525_v45 }
 0x35e   :  { %v1449_v14 = vadd.f32 %v3397_v58, %v1448_v51 }
 0x35f   :  { %v1593_v34 = vpop.f32.mrf.mxu2  ;;  %v2225_v36 = vld [vmem:[#allocation2 + $0x190] sm:$0xff]  ;;  %1770 = vst.msk [vmem:[#allocation2 + $0x198] sm:$0xff] %vm1718_vm2, %v1526_v5 }
 0x360   :  { %v1594_v57 = vadd.f32 %v3397_v58, %v1593_v34  ;;  %2226 = vst [vmem:[%s4183_s7 + $0x190] sm:$0xff] %v2225_v36  ;;  %v2163_v53 = vld [vmem:[#allocation2 + $0x98] sm:$0xff] }
 0x361   :  { %2164 = vst [vmem:[%s4183_s7 + $0x98] sm:$0xff] %v2163_v53 }
 0x362   :  { %v2279_v39 = vld [vmem:[#allocation2 + $0x268] sm:$0xff]  ;;  %1797 = vst.msk [vmem:[#allocation2 + $0x270] sm:$0xff] %vm1718_vm2, %v1594_v57 }
 0x363   :  { %2280 = vst [vmem:[%s4183_s7 + $0x268] sm:$0xff] %v2279_v39 }
 0x364   :  { %v1528_v56 = vpop.f32.mrf.mxu1  ;;  %1739 = vst.msk [vmem:[#allocation2 + $0xa0] sm:$0xff] %vm1718_vm2, %v1449_v14 }
 0x365   :  { %v1450_v3 = vpop.f32.mrf.mxu0  ;;  %v1529_v19 = vadd.f32 %v3397_v58, %v1528_v56 }
 0x366   :  { %v1451_v20 = vadd.f32 %v3397_v58, %v1450_v3  ;;  %v2227_v21 = vld [vmem:[#allocation2 + $0x198] sm:$0xff] }
 0x367   :  { %v1595_v48 = vpop.f32.mrf.mxu2  ;;  %2228 = vst [vmem:[%s4183_s7 + $0x198] sm:$0xff] %v2227_v21 }
 0x368   :  { %v1596_v50 = vadd.f32 %v3397_v58, %v1595_v48  ;;  %1771 = vst.msk [vmem:[#allocation2 + $0x1a0] sm:$0xff] %vm1718_vm2, %v1529_v19 }
 0x369   :  { %v2281_v32 = vld [vmem:[#allocation2 + $0x270] sm:$0xff]  ;;  %1740 = vst.msk [vmem:[#allocation2 + $0xa8] sm:$0xff] %vm1718_vm2, %v1451_v20 }
 0x36a   :  { %2282 = vst [vmem:[%s4183_s7 + $0x270] sm:$0xff] %v2281_v32 }
 0x36b   :  { %1798 = vst.msk [vmem:[#allocation2 + $0x278] sm:$0xff] %vm1718_vm2, %v1596_v50  ;;  %v2165_v44 = vld [vmem:[#allocation2 + $0xa0] sm:$0xff] }
 0x36c   :  { %2488 = vmatmul.msk.bf16.gmra.mxu3 %vm790_vm1, %v3420_v6  ;;  %v1530_v4 = vpop.f32.mrf.mxu1  ;;  %2166 = vst [vmem:[%s4183_s7 + $0xa0] sm:$0xff] %v2165_v44 }
 0x36d   :  { %v1453_v15 = vpop.f32.mrf.mxu0  ;;  %v1531_v27 = vadd.f32 %v3397_v58, %v1530_v4 }
 0x36e   :  { %v1454_v41 = vadd.f32 %v3397_v58, %v1453_v15 }
 0x36f   :  { %v1598_v60 = vpop.f32.mrf.mxu2  ;;  %v1638_v0 = vpop.f32.mrf.mxu3  ;;  %v2229_v34 = vld [vmem:[#allocation2 + $0x1a0] sm:$0xff]  ;;  %1772 = vst.msk [vmem:[#allocation2 + $0x1a8] sm:$0xff] %vm1718_vm2, %v1531_v27 }
 0x370   :  { %v1599_v6 = vadd.f32 %v3397_v58, %v1598_v60  ;;  %v1639_v1 = vadd.f32 %v3397_v58, %v1638_v0  ;;  %2230 = vst [vmem:[%s4183_s7 + $0x1a0] sm:$0xff] %v2229_v34  ;;  %v2167_v35 = vld [vmem:[#allocation2 + $0xa8] sm:$0xff] }
 0x371   :  { %2168 = vst [vmem:[%s4183_s7 + $0xa8] sm:$0xff] %v2167_v35 }
 0x372   :  { %v2283_v2 = vld [vmem:[#allocation2 + $0x278] sm:$0xff]  ;;  %1799 = vst.msk [vmem:[#allocation2 + $0x280] sm:$0xff] %vm1718_vm2, %v1599_v6 }
 0x373   :  { %2284 = vst [vmem:[%s4183_s7 + $0x278] sm:$0xff] %v2283_v2 }
 0x374   :  { %1815 = vst.msk [vmem:[#allocation2 + $0x300] sm:$0xff] %vm1718_vm2, %v1639_v1  ;;  %v1533_v16 = vpop.f32.mrf.mxu1 }
 0x375   :  { %v1455_v26 = vpop.f32.mrf.mxu0  ;;  %v1534_v46 = vadd.f32 %v3397_v58, %v1533_v16  ;;  %1741 = vst.msk [vmem:[#allocation2 + $0xb0] sm:$0xff] %vm1718_vm2, %v1454_v41  ;;  %v1145_v41 = vpop.trf.xlu1 }
 0x376   :  { %v1456_v48 = vadd.f32 %v3397_v58, %v1455_v26  ;;  %v2231_v49 = vld [vmem:[#allocation2 + $0x1a8] sm:$0xff]  ;;  %2463 = vmatmul.msk.bf16.gmra.mxu1 %vm790_vm1, %v1145_v41 }
 0x377   :  { %v1600_v8 = vpop.f32.mrf.mxu2  ;;  %v1640_v17 = vpop.f32.mrf.mxu3  ;;  %2232 = vst [vmem:[%s4183_s7 + $0x1a8] sm:$0xff] %v2231_v49 }
 0x378   :  { %v1601_v38 = vadd.f32 %v3397_v58, %v1600_v8  ;;  %v1641_v11 = vadd.f32 %v3397_v58, %v1640_v17  ;;  %1773 = vst.msk [vmem:[#allocation2 + $0x1b0] sm:$0xff] %vm1718_vm2, %v1534_v46 }
 0x379   :  { %v2285_v9 = vld [vmem:[#allocation2 + $0x280] sm:$0xff]  ;;  %1742 = vst.msk [vmem:[#allocation2 + $0xb8] sm:$0xff] %vm1718_vm2, %v1456_v48 }
 0x37a   :  { %2286 = vst [vmem:[%s4183_s7 + $0x280] sm:$0xff] %v2285_v9 }
 0x37b   :  { %v2317_v25 = vld [vmem:[#allocation2 + $0x300] sm:$0xff]  ;;  %1800 = vst.msk [vmem:[#allocation2 + $0x288] sm:$0xff] %vm1718_vm2, %v1601_v38 }
 0x37c   :  { %2318 = vst [vmem:[%s4183_s7 + $0x300] sm:$0xff] %v2317_v25  ;;  %2489 = vmatmul.msk.bf16.gmra.mxu3 %vm790_vm1, %v3467_v28  ;;  %v1535_v43 = vpop.f32.mrf.mxu1  ;;  %v2169_v62 = vld [vmem:[#allocation2 + $0xb0] sm:$0xff] }
 0x37d   :  { %1816 = vst.msk [vmem:[#allocation2 + $0x308] sm:$0xff] %vm1718_vm2, %v1641_v11  ;;  %v1458_v45 = vpop.f32.mrf.mxu0  ;;  %v1536_v51 = vadd.f32 %v3397_v58, %v1535_v43 }
 0x37e   :  { %2170 = vst [vmem:[%s4183_s7 + $0xb0] sm:$0xff] %v2169_v62  ;;  %v1459_v4 = vadd.f32 %v3397_v58, %v1458_v45  ;;  %v1121_v45 = vpop.trf.xlu0 }
 0x37f   :  { %v1603_v22 = vpop.f32.mrf.mxu2  ;;  %v1643_v23 = vpop.f32.mrf.mxu3  ;;  %v2233_v60 = vld [vmem:[#allocation2 + $0x1b0] sm:$0xff]  ;;  %1774 = vst.msk [vmem:[#allocation2 + $0x1b8] sm:$0xff] %vm1718_vm2, %v1536_v51  ;;  %2447 = vmatmul.msk.bf16.gmra.mxu0 %vm790_vm1, %v1121_v45 }
 0x380   :  { %v1604_v24 = vadd.f32 %v3397_v58, %v1603_v22  ;;  %v1644_v13 = vadd.f32 %v3397_v58, %v1643_v23  ;;  %2234 = vst [vmem:[%s4183_s7 + $0x1b0] sm:$0xff] %v2233_v60  ;;  %v2171_v6 = vld [vmem:[#allocation2 + $0xb8] sm:$0xff] }
 0x381   :  { %2172 = vst [vmem:[%s4183_s7 + $0xb8] sm:$0xff] %v2171_v6 }
 0x382   :  { %v2287_v28 = vld [vmem:[#allocation2 + $0x288] sm:$0xff]  ;;  %1801 = vst.msk [vmem:[#allocation2 + $0x290] sm:$0xff] %vm1718_vm2, %v1604_v24 }
 0x383   :  { %2288 = vst [vmem:[%s4183_s7 + $0x288] sm:$0xff] %v2287_v28 }
 0x384   :  { %v2319_v42 = vld [vmem:[#allocation2 + $0x308] sm:$0xff]  ;;  %1817 = vst.msk [vmem:[#allocation2 + $0x310] sm:$0xff] %vm1718_vm2, %v1644_v13  ;;  %v1538_v50 = vpop.f32.mrf.mxu1 }
 0x385   :  { %2320 = vst [vmem:[%s4183_s7 + $0x308] sm:$0xff] %v2319_v42  ;;  %v1460_v47 = vpop.f32.mrf.mxu0  ;;  %v1539_v5 = vadd.f32 %v3397_v58, %v1538_v50 }
 0x386   :  { %v1461_v8 = vadd.f32 %v3397_v58, %v1460_v47  ;;  %v2235_v17 = vld [vmem:[#allocation2 + $0x1b8] sm:$0xff]  ;;  %1743 = vst.msk [vmem:[#allocation2 + $0xc0] sm:$0xff] %vm1718_vm2, %v1459_v4 }
 0x387   :  { %v1605_v29 = vpop.f32.mrf.mxu2  ;;  %v1645_v18 = vpop.f32.mrf.mxu3  ;;  %2236 = vst [vmem:[%s4183_s7 + $0x1b8] sm:$0xff] %v2235_v17 }
 0x388   :  { %v1606_v57 = vadd.f32 %v3397_v58, %v1605_v29  ;;  %v1646_v40 = vadd.f32 %v3397_v58, %v1645_v18  ;;  %1775 = vst.msk [vmem:[#allocation2 + $0x1c0] sm:$0xff] %vm1718_vm2, %v1539_v5 }
 0x389   :  { %v2289_v39 = vld [vmem:[#allocation2 + $0x290] sm:$0xff]  ;;  %1744 = vst.msk [vmem:[#allocation2 + $0xc8] sm:$0xff] %vm1718_vm2, %v1461_v8 }
 0x38a   :  { %2290 = vst [vmem:[%s4183_s7 + $0x290] sm:$0xff] %v2289_v39 }
 0x38b   :  { %v2321_v52 = vld [vmem:[#allocation2 + $0x310] sm:$0xff]  ;;  %1802 = vst.msk [vmem:[#allocation2 + $0x298] sm:$0xff] %vm1718_vm2, %v1606_v57 }
 0x38c   :  { %2322 = vst [vmem:[%s4183_s7 + $0x310] sm:$0xff] %v2321_v52  ;;  %2490 = vmatmul.msk.bf16.gmra.mxu3 %vm790_vm1, %v3516_v54  ;;  %v1540_v1 = vpop.f32.mrf.mxu1 }
 0x38d   :  { %1818 = vst.msk [vmem:[#allocation2 + $0x318] sm:$0xff] %vm1718_vm2, %v1646_v40  ;;  %v1463_v7 = vpop.f32.mrf.mxu0  ;;  %v1541_v14 = vadd.f32 %v3397_v58, %v1540_v1  ;;  %v2173_v16 = vld [vmem:[#allocation2 + $0xc0] sm:$0xff] }
 0x38e   :  { %2174 = vst [vmem:[%s4183_s7 + $0xc0] sm:$0xff] %v2173_v16  ;;  %v1464_v28 = vadd.f32 %v3397_v58, %v1463_v7 }
 0x38f   :  { %v1608_v63 = vpop.f32.mrf.mxu2  ;;  %v1648_v31 = vpop.f32.mrf.mxu3  ;;  %v2237_v21 = vld [vmem:[#allocation2 + $0x1c0] sm:$0xff]  ;;  %1776 = vst.msk [vmem:[#allocation2 + $0x1c8] sm:$0xff] %vm1718_vm2, %v1541_v14 }
 0x390   :  { %v1609_v32 = vadd.f32 %v3397_v58, %v1608_v63  ;;  %v1649_v54 = vadd.f32 %v3397_v58, %v1648_v31  ;;  %2238 = vst [vmem:[%s4183_s7 + $0x1c0] sm:$0xff] %v2237_v21  ;;  %v2175_v23 = vld [vmem:[#allocation2 + $0xc8] sm:$0xff] }
 0x391   :  { %2176 = vst [vmem:[%s4183_s7 + $0xc8] sm:$0xff] %v2175_v23  ;;  %v1193_v23 = vpop.trf.xlu2 }
 0x392   :  { %v2291_v33 = vld [vmem:[#allocation2 + $0x298] sm:$0xff]  ;;  %1803 = vst.msk [vmem:[#allocation2 + $0x2a0] sm:$0xff] %vm1718_vm2, %v1609_v32 }
 0x393   :  { %2292 = vst [vmem:[%s4183_s7 + $0x298] sm:$0xff] %v2291_v33 }
 0x394   :  { %v2323_v56 = vld [vmem:[#allocation2 + $0x318] sm:$0xff]  ;;  %1819 = vst.msk [vmem:[#allocation2 + $0x320] sm:$0xff] %vm1718_vm2, %v1649_v54  ;;  %v1543_v11 = vpop.f32.mrf.mxu1 }
 0x395   :  { %2324 = vst [vmem:[%s4183_s7 + $0x318] sm:$0xff] %v2323_v56  ;;  %v1465_v25 = vpop.f32.mrf.mxu0  ;;  %v1544_v27 = vadd.f32 %v3397_v58, %v1543_v11 }
 0x396   :  { %v1466_v43 = vadd.f32 %v3397_v58, %v1465_v25  ;;  %v2239_v44 = vld [vmem:[#allocation2 + $0x1c8] sm:$0xff]  ;;  %1745 = vst.msk [vmem:[#allocation2 + $0xd0] sm:$0xff] %vm1718_vm2, %v1464_v28 }
 0x397   :  { %v1610_v61 = vpop.f32.mrf.mxu2  ;;  %v1650_v59 = vpop.f32.mrf.mxu3  ;;  %2240 = vst [vmem:[%s4183_s7 + $0x1c8] sm:$0xff] %v2239_v44 }
 0x398   :  { %v1611_v0 = vadd.f32 %v3397_v58, %v1610_v61  ;;  %v1651_v3 = vadd.f32 %v3397_v58, %v1650_v59  ;;  %1777 = vst.msk [vmem:[#allocation2 + $0x1d0] sm:$0xff] %vm1718_vm2, %v1544_v27 }
 0x399   :  { %v2293_v2 = vld [vmem:[#allocation2 + $0x2a0] sm:$0xff]  ;;  %1746 = vst.msk [vmem:[#allocation2 + $0xd8] sm:$0xff] %vm1718_vm2, %v1466_v43 }
 0x39a   :  { %2294 = vst [vmem:[%s4183_s7 + $0x2a0] sm:$0xff] %v2293_v2  ;;  %v4012_v2 = vld [vmem:[%s4182_s6] ss:$0 sm:$0xff] }
 0x39b   :  { %v2325_v37 = vld [vmem:[#allocation2 + $0x320] sm:$0xff]  ;;  %1804 = vst.msk [vmem:[#allocation2 + $0x2a8] sm:$0xff] %vm1718_vm2, %v1611_v0 }
 0x39c   :  { %2326 = vst [vmem:[%s4183_s7 + $0x320] sm:$0xff] %v2325_v37  ;;  %2491 = vmatmul.msk.bf16.gmra.mxu3 %vm790_vm1, %v3567_v10  ;;  %v1545_v42 = vpop.f32.mrf.mxu1 }
 0x39d   :  { %1820 = vst.msk [vmem:[#allocation2 + $0x328] sm:$0xff] %vm1718_vm2, %v1651_v3  ;;  %v1468_v57 = vpop.f32.mrf.mxu0  ;;  %v1546_v39 = vadd.f32 %v3397_v58, %v1545_v42  ;;  %v2177_v52 = vld [vmem:[#allocation2 + $0xd0] sm:$0xff] }
 0x39e   :  { %2178 = vst [vmem:[%s4183_s7 + $0xd0] sm:$0xff] %v2177_v52  ;;  %v1469_v33 = vadd.f32 %v3397_v58, %v1468_v57 }
 0x39f   :  { %v1613_v36 = vpop.f32.mrf.mxu2  ;;  %v1653_v38 = vpop.f32.mrf.mxu3  ;;  %v2241_v50 = vld [vmem:[#allocation2 + $0x1d0] sm:$0xff]  ;;  %1778 = vst.msk [vmem:[#allocation2 + $0x1d8] sm:$0xff] %vm1718_vm2, %v1546_v39 }
 0x3a0   :  { %v1614_v53 = vadd.f32 %v3397_v58, %v1613_v36  ;;  %v1654_v10 = vadd.f32 %v3397_v58, %v1653_v38  ;;  %2242 = vst [vmem:[%s4183_s7 + $0x1d0] sm:$0xff] %v2241_v50  ;;  %v2179_v31 = vld [vmem:[#allocation2 + $0xd8] sm:$0xff] }
 0x3a1   :  { %2180 = vst [vmem:[%s4183_s7 + $0xd8] sm:$0xff] %v2179_v31 }
 0x3a2   :  { %v2295_v9 = vld [vmem:[#allocation2 + $0x2a8] sm:$0xff]  ;;  %1805 = vst.msk [vmem:[#allocation2 + $0x2b0] sm:$0xff] %vm1718_vm2, %v1614_v53 }
 0x3a3   :  { %2296 = vst [vmem:[%s4183_s7 + $0x2a8] sm:$0xff] %v2295_v9 }
 0x3a4   :  { %v2327_v15 = vld [vmem:[#allocation2 + $0x328] sm:$0xff]  ;;  %1821 = vst.msk [vmem:[#allocation2 + $0x330] sm:$0xff] %vm1718_vm2, %v1654_v10  ;;  %v1548_v46 = vpop.f32.mrf.mxu1 }
 0x3a5   :  { %2328 = vst [vmem:[%s4183_s7 + $0x328] sm:$0xff] %v2327_v15  ;;  %v1470_v47 = vpop.f32.mrf.mxu0  ;;  %v1549_v56 = vadd.f32 %v3397_v58, %v1548_v46 }
 0x3a6   :  { %v1471_v62 = vadd.f32 %v3397_v58, %v1470_v47  ;;  %v2243_v61 = vld [vmem:[#allocation2 + $0x1d8] sm:$0xff]  ;;  %1747 = vst.msk [vmem:[#allocation2 + $0xe0] sm:$0xff] %vm1718_vm2, %v1469_v33 }
 0x3a7   :  { %v1615_v19 = vpop.f32.mrf.mxu2  ;;  %v1655_v20 = vpop.f32.mrf.mxu3  ;;  %2244 = vst [vmem:[%s4183_s7 + $0x1d8] sm:$0xff] %v2243_v61 }
 0x3a8   :  { %v1616_v22 = vadd.f32 %v3397_v58, %v1615_v19  ;;  %v1656_v13 = vadd.f32 %v3397_v58, %v1655_v20  ;;  %1779 = vst.msk [vmem:[#allocation2 + $0x1e0] sm:$0xff] %vm1718_vm2, %v1549_v56 }
 0x3a9   :  { %v2297_v24 = vld [vmem:[#allocation2 + $0x2b0] sm:$0xff]  ;;  %1748 = vst.msk [vmem:[#allocation2 + $0xe8] sm:$0xff] %vm1718_vm2, %v1471_v62 }
 0x3aa   :  { %2298 = vst [vmem:[%s4183_s7 + $0x2b0] sm:$0xff] %v2297_v24 }
 0x3ab   :  { %v2329_v26 = vld [vmem:[#allocation2 + $0x330] sm:$0xff]  ;;  %1806 = vst.msk [vmem:[#allocation2 + $0x2b8] sm:$0xff] %vm1718_vm2, %v1616_v22 }
 0x3ac   :  { %2330 = vst [vmem:[%s4183_s7 + $0x330] sm:$0xff] %v2329_v26  ;;  %2492 = vmatmul.msk.bf16.gmra.mxu3 %vm790_vm1, %v3618_v30 }
 0x3ad   :  { %1822 = vst.msk [vmem:[#allocation2 + $0x338] sm:$0xff] %vm1718_vm2, %v1656_v13  ;;  %v2181_v4 = vld [vmem:[#allocation2 + $0xe0] sm:$0xff] }
 0x3ae   :  { %2182 = vst [vmem:[%s4183_s7 + $0xe0] sm:$0xff] %v2181_v4 }
 0x3af   :  { %v1618_v29 = vpop.f32.mrf.mxu2  ;;  %v1658_v18 = vpop.f32.mrf.mxu3  ;;  %v2245_v7 = vld [vmem:[#allocation2 + $0x1e0] sm:$0xff] }
 0x3b0   :  { %v1619_v34 = vadd.f32 %v3397_v58, %v1618_v29  ;;  %v1659_v30 = vadd.f32 %v3397_v58, %v1658_v18  ;;  %2246 = vst [vmem:[%s4183_s7 + $0x1e0] sm:$0xff] %v2245_v7  ;;  %v2183_v17 = vld [vmem:[#allocation2 + $0xe8] sm:$0xff] }
 0x3b1   :  { %2184 = vst [vmem:[%s4183_s7 + $0xe8] sm:$0xff] %v2183_v17 }
 0x3b2   :  { %v2299_v35 = vld [vmem:[#allocation2 + $0x2b8] sm:$0xff]  ;;  %1807 = vst.msk [vmem:[#allocation2 + $0x2c0] sm:$0xff] %vm1718_vm2, %v1619_v34 }
 0x3b3   :  { %2300 = vst [vmem:[%s4183_s7 + $0x2b8] sm:$0xff] %v2299_v35 }
 0x3b4   :  { %v2331_v40 = vld [vmem:[#allocation2 + $0x338] sm:$0xff]  ;;  %1823 = vst.msk [vmem:[#allocation2 + $0x340] sm:$0xff] %vm1718_vm2, %v1659_v30 }
 0x3b5   :  { %2332 = vst [vmem:[%s4183_s7 + $0x338] sm:$0xff] %v2331_v40 }
 0x3b7   :  { %v1620_v48 = vpop.f32.mrf.mxu2  ;;  %v1660_v49 = vpop.f32.mrf.mxu3 }
 0x3b8   :  { %v1621_v63 = vadd.f32 %v3397_v58, %v1620_v48  ;;  %v1661_v54 = vadd.f32 %v3397_v58, %v1660_v49 }
 0x3b9   :  { %v2301_v32 = vld [vmem:[#allocation2 + $0x2c0] sm:$0xff] }
 0x3ba   :  { %2302 = vst [vmem:[%s4183_s7 + $0x2c0] sm:$0xff] %v2301_v32 }
 0x3bb   :  { %v2333_v51 = vld [vmem:[#allocation2 + $0x340] sm:$0xff]  ;;  %1808 = vst.msk [vmem:[#allocation2 + $0x2c8] sm:$0xff] %vm1718_vm2, %v1621_v63 }
 0x3bc   :  { %2334 = vst [vmem:[%s4183_s7 + $0x340] sm:$0xff] %v2333_v51  ;;  %2493 = vmatmul.msk.bf16.gmra.mxu3 %vm790_vm1, %v3665_v55  ;;  %v1550_v55 = vpop.f32.mrf.mxu1 }
 0x3bd   :  { %1824 = vst.msk [vmem:[#allocation2 + $0x348] sm:$0xff] %vm1718_vm2, %v1661_v54  ;;  %v1551_v3 = vadd.f32 %v4012_v2, %v1550_v55 }
 0x3bf   :  { %v1623_v59 = vpop.f32.mrf.mxu2  ;;  %v1663_v60 = vpop.f32.mrf.mxu3  ;;  %1780 = vst.msk [vmem:[#allocation2 + $0x1e8] sm:$0xff] %vm1718_vm2, %v1551_v3 }
 0x3c0   :  { %v1624_v0 = vadd.f32 %v3397_v58, %v1623_v59  ;;  %v1664_v6 = vadd.f32 %v3397_v58, %v1663_v60 }
 0x3c2   :  { %v2303_v1 = vld [vmem:[#allocation2 + $0x2c8] sm:$0xff]  ;;  %1809 = vst.msk [vmem:[#allocation2 + $0x2d0] sm:$0xff] %vm1718_vm2, %v1624_v0 }
 0x3c3   :  { %2304 = vst [vmem:[%s4183_s7 + $0x2c8] sm:$0xff] %v2303_v1 }
 0x3c4   :  { %v2335_v58 = vld [vmem:[#allocation2 + $0x348] sm:$0xff]  ;;  %1825 = vst.msk [vmem:[#allocation2 + $0x350] sm:$0xff] %vm1718_vm2, %v1664_v6 }
 0x3c5   :  { %2336 = vst [vmem:[%s4183_s7 + $0x348] sm:$0xff] %v2335_v58 }
 0x3c6   :  { %v2247_v10 = vld [vmem:[#allocation2 + $0x1e8] sm:$0xff] }
 0x3c7   :  { %v1625_v37 = vpop.f32.mrf.mxu2  ;;  %v1665_v5 = vpop.f32.mrf.mxu3  ;;  %2248 = vst [vmem:[%s4183_s7 + $0x1e8] sm:$0xff] %v2247_v10 }
 0x3c8   :  { %v1626_v8 = vadd.f32 %v4012_v2, %v1625_v37  ;;  %v1666_v38 = vadd.f32 %v4012_v2, %v1665_v5 }
 0x3c9   :  { %v2305_v36 = vld [vmem:[#allocation2 + $0x2d0] sm:$0xff] }
 0x3ca   :  { %2306 = vst [vmem:[%s4183_s7 + $0x2d0] sm:$0xff] %v2305_v36 }
 0x3cb   :  { %v2337_v53 = vld [vmem:[#allocation2 + $0x350] sm:$0xff]  ;;  %1810 = vst.msk [vmem:[#allocation2 + $0x2d8] sm:$0xff] %vm1718_vm2, %v1626_v8 }
 0x3cc   :  { %2338 = vst [vmem:[%s4183_s7 + $0x350] sm:$0xff] %v2337_v53  ;;  %2494 = vmatmul.msk.bf16.gmra.mxu3 %vm790_vm1, %v3704_v12 }
 0x3cd   :  { %1826 = vst.msk [vmem:[#allocation2 + $0x358] sm:$0xff] %vm1718_vm2, %v1666_v38 }
 0x3cf   :  { %v1628_v9 = vpop.f32.mrf.mxu2  ;;  %v1668_v11 = vpop.f32.mrf.mxu3 }
 0x3d0   :  { %v1629_v14 = vadd.f32 %v4012_v2, %v1628_v9  ;;  %v1669_v15 = vadd.f32 %v4012_v2, %v1668_v11 }
 0x3d2   :  { %v2307_v16 = vld [vmem:[#allocation2 + $0x2d8] sm:$0xff]  ;;  %1811 = vst.msk [vmem:[#allocation2 + $0x2e0] sm:$0xff] %vm1718_vm2, %v1629_v14 }
 0x3d3   :  { %2308 = vst [vmem:[%s4183_s7 + $0x2d8] sm:$0xff] %v2307_v16 }
 0x3d4   :  { %v2339_v12 = vld [vmem:[#allocation2 + $0x358] sm:$0xff]  ;;  %1827 = vst.msk [vmem:[#allocation2 + $0x360] sm:$0xff] %vm1718_vm2, %v1669_v15 }
 0x3d5   :  { %2340 = vst [vmem:[%s4183_s7 + $0x358] sm:$0xff] %v2339_v12 }
 0x3d7   :  { %v1630_v25 = vpop.f32.mrf.mxu2  ;;  %v1670_v19 = vpop.f32.mrf.mxu3 }
 0x3d8   :  { %v1631_v20 = vadd.f32 %v4012_v2, %v1630_v25  ;;  %v1671_v22 = vadd.f32 %v4012_v2, %v1670_v19 }
 0x3d9   :  { %v2309_v21 = vld [vmem:[#allocation2 + $0x2e0] sm:$0xff] }
 0x3da   :  { %2310 = vst [vmem:[%s4183_s7 + $0x2e0] sm:$0xff] %v2309_v21 }
 0x3db   :  { %v2341_v24 = vld [vmem:[#allocation2 + $0x360] sm:$0xff]  ;;  %1812 = vst.msk [vmem:[#allocation2 + $0x2e8] sm:$0xff] %vm1718_vm2, %v1631_v20 }
 0x3dc   :  { %2342 = vst [vmem:[%s4183_s7 + $0x360] sm:$0xff] %v2341_v24  ;;  %2495 = vmatmul.msk.bf16.gmra.mxu3 %vm790_vm1, %v1193_v23 }
 0x3dd   :  { %1828 = vst.msk [vmem:[#allocation2 + $0x368] sm:$0xff] %vm1718_vm2, %v1671_v22 }
 0x3df   :  { %v1633_v13 = vpop.f32.mrf.mxu2  ;;  %v1673_v28 = vpop.f32.mrf.mxu3 }
 0x3e0   :  { %v1634_v26 = vadd.f32 %v4012_v2, %v1633_v13  ;;  %v1674_v27 = vadd.f32 %v4012_v2, %v1673_v28 }
 0x3e2   :  { %v2311_v42 = vld [vmem:[#allocation2 + $0x2e8] sm:$0xff]  ;;  %1813 = vst.msk [vmem:[#allocation2 + $0x2f0] sm:$0xff] %vm1718_vm2, %v1634_v26 }
 0x3e3   :  { %2312 = vst [vmem:[%s4183_s7 + $0x2e8] sm:$0xff] %v2311_v42 }
 0x3e4   :  { %v2343_v43 = vld [vmem:[#allocation2 + $0x368] sm:$0xff]  ;;  %1829 = vst.msk [vmem:[#allocation2 + $0x370] sm:$0xff] %vm1718_vm2, %v1674_v27 }
 0x3e5   :  { %2344 = vst [vmem:[%s4183_s7 + $0x368] sm:$0xff] %v2343_v43 }
 0x3e7   :  { %v1635_v44 = vpop.f32.mrf.mxu2  ;;  %v1675_v29 = vpop.f32.mrf.mxu3 }
 0x3e8   :  { %v1636_v18 = vadd.f32 %v4012_v2, %v1635_v44  ;;  %v1676_v30 = vadd.f32 %v4012_v2, %v1675_v29 }
 0x3e9   :  { %v2313_v34 = vld [vmem:[#allocation2 + $0x2f0] sm:$0xff] }
 0x3ea   :  { %2314 = vst [vmem:[%s4183_s7 + $0x2f0] sm:$0xff] %v2313_v34 }
 0x3eb   :  { %v2345_v57 = vld [vmem:[#allocation2 + $0x370] sm:$0xff]  ;;  %1814 = vst.msk [vmem:[#allocation2 + $0x2f8] sm:$0xff] %vm1718_vm2, %v1636_v18 }
 0x3ec   :  { %2346 = vst [vmem:[%s4183_s7 + $0x370] sm:$0xff] %v2345_v57 }
 0x3ed   :  { %1830 = vst.msk [vmem:[#allocation2 + $0x378] sm:$0xff] %vm1718_vm2, %v1676_v30 }
 0x3ef   :  { %v1678_v35 = vpop.f32.mrf.mxu3 }
 0x3f0   :  { %v1679_v39 = vadd.f32 %v4012_v2, %v1678_v35 }
 0x3f2   :  { %v2315_v40 = vld [vmem:[#allocation2 + $0x2f8] sm:$0xff]  ;;  %1831 = vst.msk [vmem:[#allocation2 + $0x380] sm:$0xff] %vm1718_vm2, %v1679_v39 }
 0x3f3   :  { %2316 = vst [vmem:[%s4183_s7 + $0x2f8] sm:$0xff] %v2315_v40  ;;  %v1553_v37 = vpop.f32.mrf.mxu1 }
 0x3f4   :  { %v2347_v41 = vld [vmem:[#allocation2 + $0x378] sm:$0xff]  ;;  %v1554_v53 = vadd.f32 %v4012_v2, %v1553_v37 }
 0x3f5   :  { %2348 = vst [vmem:[%s4183_s7 + $0x378] sm:$0xff] %v2347_v41 }
 0x3f6   :  { %1781 = vst.msk [vmem:[#allocation2 + $0x1f0] sm:$0xff] %vm1718_vm2, %v1554_v53 }
 0x3f7   :  { %v1680_v45 = vpop.f32.mrf.mxu3 }
 0x3f8   :  { %v1681_v52 = vadd.f32 %v4012_v2, %v1680_v45 }
 0x3f9   :  { %v2349_v46 = vld [vmem:[#allocation2 + $0x380] sm:$0xff] }
 0x3fa   :  { %2350 = vst [vmem:[%s4183_s7 + $0x380] sm:$0xff] %v2349_v46 }
 0x3fb   :  { %1832 = vst.msk [vmem:[#allocation2 + $0x388] sm:$0xff] %vm1718_vm2, %v1681_v52  ;;  %v1555_v36 = vpop.f32.mrf.mxu1 }
 0x3fc   :  { %v1473_v4 = vpop.f32.mrf.mxu0  ;;  %v1556_v9 = vadd.f32 %v4012_v2, %v1555_v36 }
 0x3fd   :  { %v1474_v38 = vadd.f32 %v4012_v2, %v1473_v4  ;;  %v2249_v12 = vld [vmem:[#allocation2 + $0x1f0] sm:$0xff] }
 0x3fe   :  { %1782 = vst.msk [vmem:[#allocation2 + $0x1f8] sm:$0xff] %vm1718_vm2, %v1556_v9 }
 0x3ff   :  { %v1683_v48 = vpop.f32.mrf.mxu3  ;;  %1749 = vst.msk [vmem:[#allocation2 + $0xf0] sm:$0xff] %vm1718_vm2, %v1474_v38 }
 0x400   :  { %v1684_v49 = vadd.f32 %v4012_v2, %v1683_v48  ;;  %2250 = vst [vmem:[%s4183_s7 + $0x1f0] sm:$0xff] %v2249_v12 }
 0x402   :  { %v2351_v50 = vld [vmem:[#allocation2 + $0x388] sm:$0xff]  ;;  %1833 = vst.msk [vmem:[#allocation2 + $0x390] sm:$0xff] %vm1718_vm2, %v1684_v49 }
 0x403   :  { %2352 = vst [vmem:[%s4183_s7 + $0x388] sm:$0xff] %v2351_v50 }
 0x404   :  { %v1475_v17 = vpop.f32.mrf.mxu0 }
 0x405   :  { %v1476_v10 = vadd.f32 %v4012_v2, %v1475_v17  ;;  %v2251_v20 = vld [vmem:[#allocation2 + $0x1f8] sm:$0xff] }
 0x406   :  { %v2185_v16 = vld [vmem:[#allocation2 + $0xf0] sm:$0xff]  ;;  %2252 = vst [vmem:[%s4183_s7 + $0x1f8] sm:$0xff] %v2251_v20 }
 0x407   :  { %v1685_v63 = vpop.f32.mrf.mxu3  ;;  %1750 = vst.msk [vmem:[#allocation2 + $0xf8] sm:$0xff] %vm1718_vm2, %v1476_v10 }
 0x408   :  { %v1686_v31 = vadd.f32 %v4012_v2, %v1685_v63  ;;  %2186 = vst [vmem:[%s4183_s7 + $0xf0] sm:$0xff] %v2185_v16 }
 0x409   :  { %v2353_v32 = vld [vmem:[#allocation2 + $0x390] sm:$0xff] }
 0x40a   :  { %2354 = vst [vmem:[%s4183_s7 + $0x390] sm:$0xff] %v2353_v32 }
 0x40b   :  { %1834 = vst.msk [vmem:[#allocation2 + $0x398] sm:$0xff] %vm1718_vm2, %v1686_v31 }
 0x40e   :  { %v2187_v25 = vld [vmem:[#allocation2 + $0xf8] sm:$0xff] }
 0x40f   :  { %v1688_v54 = vpop.f32.mrf.mxu3  ;;  %2188 = vst [vmem:[%s4183_s7 + $0xf8] sm:$0xff] %v2187_v25 }
 0x410   :  { %v1689_v33 = vadd.f32 %v4012_v2, %v1688_v54 }
 0x412   :  { %v2355_v47 = vld [vmem:[#allocation2 + $0x398] sm:$0xff]  ;;  %1835 = vst.msk [vmem:[#allocation2 + $0x3a0] sm:$0xff] %vm1718_vm2, %v1689_v33 }
 0x413   :  { %2356 = vst [vmem:[%s4183_s7 + $0x398] sm:$0xff] %v2355_v47 }
 0x417   :  { %v1690_v51 = vpop.f32.mrf.mxu3 }
 0x418   :  { %v1691_v56 = vadd.f32 %v4012_v2, %v1690_v51 }
 0x419   :  { %v2357_v62 = vld [vmem:[#allocation2 + $0x3a0] sm:$0xff] }
 0x41a   :  { %2358 = vst [vmem:[%s4183_s7 + $0x3a0] sm:$0xff] %v2357_v62 }
 0x41b   :  { %1836 = vst.msk [vmem:[#allocation2 + $0x3a8] sm:$0xff] %vm1718_vm2, %v1691_v56 }
 0x41f   :  { %v1693_v61 = vpop.f32.mrf.mxu3 }
 0x420   :  { %v1694_v59 = vadd.f32 %v4012_v2, %v1693_v61 }
 0x422   :  { %v2359_v60 = vld [vmem:[#allocation2 + $0x3a8] sm:$0xff]  ;;  %1837 = vst.msk [vmem:[#allocation2 + $0x3b0] sm:$0xff] %vm1718_vm2, %v1694_v59 }
 0x423   :  { %2360 = vst [vmem:[%s4183_s7 + $0x3a8] sm:$0xff] %v2359_v60 }
 0x427   :  { %v1695_v0 = vpop.f32.mrf.mxu3 }
 0x428   :  { %v1696_v6 = vadd.f32 %v4012_v2, %v1695_v0 }
 0x429   :  { %v2361_v55 = vld [vmem:[#allocation2 + $0x3b0] sm:$0xff] }
 0x42a   :  { %2362 = vst [vmem:[%s4183_s7 + $0x3b0] sm:$0xff] %v2361_v55 }
 0x42b   :  { %1838 = vst.msk [vmem:[#allocation2 + $0x3b8] sm:$0xff] %vm1718_vm2, %v1696_v6 }
 0x42f   :  { %v1698_v1 = vpop.f32.mrf.mxu3 }
 0x430   :  { %v1699_v3 = vadd.f32 %v4012_v2, %v1698_v1 }
 0x432   :  { %v2363_v58 = vld [vmem:[#allocation2 + $0x3b8] sm:$0xff]  ;;  %1839 = vst.msk [vmem:[#allocation2 + $0x3c0] sm:$0xff] %vm1718_vm2, %v1699_v3 }
 0x433   :  { %2364 = vst [vmem:[%s4183_s7 + $0x3b8] sm:$0xff] %v2363_v58 }
 0x437   :  { %v1700_v5 = vpop.f32.mrf.mxu3 }
 0x438   :  { %v1701_v7 = vadd.f32 %v4012_v2, %v1700_v5 }
 0x439   :  { %v2365_v8 = vld [vmem:[#allocation2 + $0x3c0] sm:$0xff] }
 0x43a   :  { %2366 = vst [vmem:[%s4183_s7 + $0x3c0] sm:$0xff] %v2365_v8 }
 0x43b   :  { %1840 = vst.msk [vmem:[#allocation2 + $0x3c8] sm:$0xff] %vm1718_vm2, %v1701_v7 }
 0x43f   :  { %v1703_v11 = vpop.f32.mrf.mxu3 }
 0x440   :  { %v1704_v14 = vadd.f32 %v4012_v2, %v1703_v11 }
 0x442   :  { %v2367_v15 = vld [vmem:[#allocation2 + $0x3c8] sm:$0xff]  ;;  %1841 = vst.msk [vmem:[#allocation2 + $0x3d0] sm:$0xff] %vm1718_vm2, %v1704_v14 }
 0x443   :  { %2368 = vst [vmem:[%s4183_s7 + $0x3c8] sm:$0xff] %v2367_v15 }
 0x447   :  { %v1705_v19 = vpop.f32.mrf.mxu3 }
 0x448   :  { %v1706_v21 = vadd.f32 %v4012_v2, %v1705_v19 }
 0x449   :  { %v2369_v22 = vld [vmem:[#allocation2 + $0x3d0] sm:$0xff] }
 0x44a   :  { %2370 = vst [vmem:[%s4183_s7 + $0x3d0] sm:$0xff] %v2369_v22 }
 0x44b   :  { %1842 = vst.msk [vmem:[#allocation2 + $0x3d8] sm:$0xff] %vm1718_vm2, %v1706_v21 }
 0x44f   :  { %v1708_v23 = vpop.f32.mrf.mxu3 }
 0x450   :  { %v1709_v24 = vadd.f32 %v4012_v2, %v1708_v23 }
 0x452   :  { %v2371_v13 = vld [vmem:[#allocation2 + $0x3d8] sm:$0xff]  ;;  %1843 = vst.msk [vmem:[#allocation2 + $0x3e0] sm:$0xff] %vm1718_vm2, %v1709_v24 }
 0x453   :  { %2372 = vst [vmem:[%s4183_s7 + $0x3d8] sm:$0xff] %v2371_v13 }
 0x457   :  { %v1710_v28 = vpop.f32.mrf.mxu3 }
 0x459   :  { %v2373_v26 = vld [vmem:[#allocation2 + $0x3e0] sm:$0xff] }
 0x45a   :  { %2374 = vst [vmem:[%s4183_s7 + $0x3e0] sm:$0xff] %v2373_v26 }
 0x45f   :  { %v1713_v27 = vpop.f32.mrf.mxu3 }
 0x467   :  { %v1715_v42 = vpop.f32.mrf.mxu3 }

</bundles_post_ra>
